<compile_context>
chip_gen: v7x
topology: tpu7x:2x2x1
jax: 0.10.0
libtpu: 0.0.40
codegen_flags: <defaults>
</compile_context>

<pallas_src>
import functools

import jax
import jax.numpy as jnp
from jax import lax
from jax.experimental import pallas as pl
from jax.experimental.pallas import tpu as pltpu

_LANE = 128      # vreg lane width (last dim)
_SUBLANE = 8     # vreg sublane width (second-to-last dim)


def _rup(x, m):
    return (x + m - 1) // m * m


def _pad2(a, rows, cols):
    return jnp.pad(a, ((0, rows - a.shape[0]), (0, cols - a.shape[1])))


# ---------------------------------------------------------------------------
# Fused forward kernel:
#   per layer: h = BNfold( ReLU( ReLU( (h + A h) W1 + b1 ) W2 + b2 ) )
#   then:      log_softmax( ReLU( mean_pool(h) L1 + c1 ) L2 + c2 )
# All matmuls: bf16 operands, f32 accumulation. Epilogues f32.
# ---------------------------------------------------------------------------
def _make_fused_kernel(num_layers, num_classes):
    def kernel(adj_ref, x_ref, pool_ref, inv_ref, w_ref, v_ref, out_ref):
        adj = adj_ref[...]          # [Np, Np] bf16 edge counts (exact, counts < 256)
        h = x_ref[...]              # [Np, D]  bf16, stays bf16 across layers

        # Static unroll: L is small here. TODO(synk): if num_layers grows, keep
        # the weight/vector stacks and iterate with lax.fori_loop instead.
        for l in range(num_layers):
            w1 = w_ref[2 * l]                               # [D, D] bf16
            w2 = w_ref[2 * l + 1]                           # [D, D] bf16
            b1 = v_ref[pl.ds(4 * l, 1), :]                  # [1, D] f32
            b2 = v_ref[pl.ds(4 * l + 1, 1), :]
            scale = v_ref[pl.ds(4 * l + 2, 1), :]           # folded BN scale
            shift = v_ref[pl.ds(4 * l + 3, 1), :]           # folded BN shift

            # GINConv eps=0 sum aggregation: (I + A) h == h + A h.
            agg = jnp.dot(adj, h, preferred_element_type=jnp.float32)
            agg = agg + h.astype(jnp.float32)               # f32 epilogue add

            t = jnp.dot(agg.astype(jnp.bfloat16), w1,
                        preferred_element_type=jnp.float32) + b1
            t = jnp.maximum(t, 0.0)
            t = jnp.dot(t.astype(jnp.bfloat16), w2,
                        preferred_element_type=jnp.float32) + b2
            t = jnp.maximum(t, 0.0)
            # BatchNorm1d (inference) pre-folded to a single FMA; one bf16 cast
            # per layer keeps h (the largest activation) half-width.
            h = (t * scale + shift).astype(jnp.bfloat16)

        # global_mean_pool: exact 0/1 one-hot on the bf16 MXU, then exact f32
        # 1/count scaling per graph.
        g = jnp.dot(pool_ref[...], h, preferred_element_type=jnp.float32)
        g = g * inv_ref[...]                                # [Gp,1] broadcast

        lw1 = w_ref[2 * num_layers]
        lw2 = w_ref[2 * num_layers + 1]
        lb1 = v_ref[pl.ds(4 * num_layers, 1), :]
        lb2 = v_ref[pl.ds(4 * num_layers + 1, 1), :]

        t = jnp.dot(g.astype(jnp.bfloat16), lw1,
                    preferred_element_type=jnp.float32) + lb1
        t = jnp.maximum(t, 0.0)
        # F.dropout(p=0.5, training=False) is the identity.
        logits = jnp.dot(t.astype(jnp.bfloat16), lw2,
                         preferred_element_type=jnp.float32) + lb2

        # Numerically-stable log_softmax over real class lanes only (class dim
        # is zero-padded to the lane-dense width D).
        lane = lax.broadcasted_iota(jnp.int32, logits.shape, 1)
        logits = jnp.where(lane < num_classes, logits, -1e30)
        m = jnp.max(logits, axis=-1, keepdims=True)
        z = logits - m
        lse = jnp.log(jnp.sum(jnp.exp(z), axis=-1, keepdims=True))
        out_ref[...] = z - lse

    return kernel


# ---------------------------------------------------------------------------
# Full GIN0 forward. Glue in plain JAX: dense adjacency / pooling one-hot
# construction (data-dependent scatter-add), padding, BN folding, stacking.
# ---------------------------------------------------------------------------
def gin0_forward(x, edge_index, batch, params, num_graphs):
    n, f = x.shape
    hidden = params["lin1_w"].shape[0]
    num_classes = params["lin2_w"].shape[1]
    layers = [params["conv1"]] + list(params["convs"])
    num_layers = len(layers)

    n_pad = _rup(n, _LANE)
    g_pad = _rup(num_graphs, _SUBLANE)
    # One uniform lane-dense width for all weight slabs in the stack.
    d_pad = max(_rup(f, _LANE), _rup(hidden, _LANE), _rup(num_classes, _LANE))

    # Dense A with A[tgt, src] = #edges src->tgt (no +I; identity added in-kernel).
    # Multi-edge counts < 256 -> exact in bf16.
    src, tgt = edge_index[0], edge_index[1]
    adj = jnp.zeros((n, n), jnp.float32).at[tgt, src].add(1.0)
    adj = _pad2(adj, n_pad, n_pad).astype(jnp.bfloat16)

    x_p = _pad2(x, n_pad, d_pad).astype(jnp.bfloat16)

    # Exact 0/1 pooling one-hot (bf16) + per-graph 1/count (f32). Zero columns
    # for padded nodes / zero rows for padded graphs neutralize padding.
    onehot = (batch[None, :] == jnp.arange(num_graphs)[:, None]).astype(jnp.float32)
    pool = _pad2(onehot, g_pad, n_pad).astype(jnp.bfloat16)
    counts = jnp.zeros((num_graphs,), jnp.float32).at[batch].add(1.0)
    inv = (1.0 / jnp.maximum(counts, 1.0))[:, None]
    inv = jnp.pad(inv, ((0, g_pad - num_graphs), (0, 0)))          # [Gp, 1]

    # Coalesced parameter stacks: one bf16 weight slab + one f32 vector slab.
    w_list, v_list = [], []
    for p in layers:
        bn_scale = p["gamma"] * lax.rsqrt(p["var"] + 1e-5)
        bn_shift = p["beta"] - p["mean"] * bn_scale
        w_list += [_pad2(p["w1"], d_pad, d_pad), _pad2(p["w2"], d_pad, d_pad)]
        v_list += [_pad2(p["b1"], 1, d_pad), _pad2(p["b2"], 1, d_pad),
                   _pad2(bn_scale, 1, d_pad), _pad2(bn_shift, 1, d_pad)]
    w_list += [_pad2(params["lin1_w"], d_pad, d_pad),
               _pad2(params["lin2_w"], d_pad, d_pad)]
    v_list += [_pad2(params["lin1_b"], 1, d_pad),
               _pad2(params["lin2_b"], 1, d_pad)]
    w_stack = jnp.stack(w_list).astype(jnp.bfloat16)   # [2L+2, D, D] bf16
    v_stack = jnp.concatenate(v_list, axis=0)          # [4L+2, D]    f32

    all_args = [adj, x_p, pool, inv, w_stack, v_stack]
    in_bytes = sum(int(a.size) * jnp.dtype(a.dtype).itemsize for a in all_args)
    out_bytes = g_pad * d_pad * 4
    total_bytes = in_bytes + out_bytes

    # Per-generation VMEM cap with headroom (never request the full physical
    # VMEM: compiler internal scratch / output buffering needs room).
    try:
        vmem_cap = int(getattr(pltpu.get_tpu_info(), "vmem_capacity_bytes",
                               64 * 2**20))
    except Exception:
        vmem_cap = 64 * 2**20
    vmem_limit = int(min(int(0.75 * vmem_cap), max(32 * 2**20, 4 * total_bytes)))

    # Advisory cost estimate for the XLA scheduler.
    flops = (num_layers * (2 * n_pad * n_pad * d_pad + 4 * n_pad * d_pad * d_pad)
             + 2 * g_pad * n_pad * d_pad + 4 * g_pad * d_pad * d_pad)
    cost = pl.CostEstimate(flops=flops,
                           transcendentals=g_pad * d_pad,
                           bytes_accessed=total_bytes)

    out_pad = pl.pallas_call(
        _make_fused_kernel(num_layers, num_classes),
        out_shape=jax.ShapeDtypeStruct((g_pad, d_pad), jnp.float32),
        in_specs=[pl.BlockSpec(memory_space=pltpu.MemorySpace.VMEM)] * len(all_args),
        out_specs=pl.BlockSpec(memory_space=pltpu.MemorySpace.VMEM),
        compiler_params=pltpu.CompilerParams(vmem_limit_bytes=vmem_limit),
        cost_estimate=cost,
    )(*all_args)

    return out_pad[:num_graphs, :num_classes]


# ---------------------------------------------------------------------------
# Deterministic parameter init (shapes follow GIN0.__init__)
# ---------------------------------------------------------------------------
def init_gin_mlp(key, f_in, hidden):
    k1, k2, k3, k4, k5, k6 = jax.random.split(key, 6)
    return dict(
        w1=0.1 * jax.random.normal(k1, (f_in, hidden), jnp.float32),
        b1=0.1 * jax.random.normal(k2, (1, hidden), jnp.float32),
        w2=0.1 * jax.random.normal(k3, (hidden, hidden), jnp.float32),
        b2=0.1 * jax.random.normal(k4, (1, hidden), jnp.float32),
        gamma=1.0 + 0.1 * jax.random.normal(k5, (1, hidden), jnp.float32),
        beta=0.1 * jax.random.normal(k6, (1, hidden), jnp.float32),
        mean=jnp.zeros((1, hidden), jnp.float32),   # BN running_mean
        var=jnp.ones((1, hidden), jnp.float32),     # BN running_var
    )


def init_params(key, num_features, hidden, num_classes, num_layers):
    keys = jax.random.split(key, num_layers + 2)
    params = dict(conv1=init_gin_mlp(keys[0], num_features, hidden), convs=[])
    for i in range(num_layers - 1):
        params["convs"].append(init_gin_mlp(keys[1 + i], hidden, hidden))
    kl1, kl2 = jax.random.split(keys[-1])
    k1a, k1b = jax.random.split(kl1)
    k2a, k2b = jax.random.split(kl2)
    params["lin1_w"] = 0.1 * jax.random.normal(k1a, (hidden, hidden), jnp.float32)
    params["lin1_b"] = 0.1 * jax.random.normal(k1b, (1, hidden), jnp.float32)
    params["lin2_w"] = 0.1 * jax.random.normal(k2a, (hidden, num_classes), jnp.float32)
    params["lin2_b"] = 0.1 * jax.random.normal(k2b, (1, num_classes), jnp.float32)
    return params


if __name__ == "__main__":
    NUM_FEATURES = 16
    HIDDEN = 32
    NUM_CLASSES = 4
    NUM_LAYERS = 3
    NODES_PER_GRAPH = 16
    NUM_GRAPHS = 2
    N = NODES_PER_GRAPH * NUM_GRAPHS  # 32 nodes total

    key = jax.random.PRNGKey(0)
    kx, kp = jax.random.split(key)

    # Node features [N, F]
    x = jax.random.normal(kx, (N, NUM_FEATURES), jnp.float32)

    # Bidirectional ring edges inside each graph -> edge_index [2, E], E = 64
    srcs, tgts = [], []
    for g in range(NUM_GRAPHS):
        off = g * NODES_PER_GRAPH
        i = jnp.arange(NODES_PER_GRAPH)
        srcs.append(jnp.concatenate([i, (i + 1) % NODES_PER_GRAPH]) + off)
        tgts.append(jnp.concatenate([(i + 1) % NODES_PER_GRAPH, i]) + off)
    edge_index = jnp.stack([jnp.concatenate(srcs), jnp.concatenate(tgts)]).astype(jnp.int32)

    # Graph assignment per node [N]
    batch = jnp.repeat(jnp.arange(NUM_GRAPHS, dtype=jnp.int32), NODES_PER_GRAPH)

    params = init_params(kp, NUM_FEATURES, HIDDEN, NUM_CLASSES, NUM_LAYERS)

    fwd = jax.jit(functools.partial(gin0_forward, num_graphs=NUM_GRAPHS))
    out = fwd(x, edge_index, batch, params)
    out = jax.block_until_ready(out)

    assert out.shape == (NUM_GRAPHS, NUM_CLASSES)
    # log_softmax rows sum to 1 in prob space (bf16 matmuls -> relaxed tol)
    assert jnp.allclose(jnp.sum(jnp.exp(out), axis=-1), 1.0, atol=1e-3)
    assert bool(jnp.all(jnp.isfinite(out)))
    print("KERNEL_OK")
</pallas_src>

<mosaic_0001>
module attributes {stable_mosaic.version = 11 : i64} {
  func.func private @main(%arg0: i32) attributes {dimension_semantics = [#tpu.dimension_semantics<core_parallel>], iteration_bounds = array<i64: 2>, tpu.core_type = #tpu.core_type<sc_scalar_subcore>, window_params = []} {
    return
  }
}

module attributes {stable_mosaic.version = 11 : i64} {
  func.func private @main(%arg0: i32) attributes {dimension_semantics = [#tpu.dimension_semantics<core_parallel>], iteration_bounds = array<i64: 2>, tpu.core_type = #tpu.core_type<sc_scalar_subcore>, window_params = []} {
    return
  }
}

module attributes {stable_mosaic.version = 11 : i64} {
  func.func @kernel(%arg0: memref<128x128xbf16, #tpu.memory_space<vmem>>, %arg1: memref<128x128xbf16, #tpu.memory_space<vmem>>, %arg2: memref<8x128xbf16, #tpu.memory_space<vmem>>, %arg3: memref<8x1xf32, #tpu.memory_space<vmem>>, %arg4: memref<8x128x128xbf16, #tpu.memory_space<vmem>>, %arg5: memref<14x128xf32, #tpu.memory_space<vmem>>, %arg6: memref<8x128xf32, #tpu.memory_space<vmem>>) attributes {dimension_semantics = [], scalar_prefetch = 0 : i64, scratch_operands = 0 : i64, tpu.core_type = #tpu.core_type<tc>} {
    %c0 = arith.constant 0 : index
    %c0_0 = arith.constant 0 : index
    %0 = vector.load %arg0[%c0, %c0_0] : memref<128x128xbf16, #tpu.memory_space<vmem>>, vector<128x128xbf16>
    %c0_1 = arith.constant 0 : index
    %c0_2 = arith.constant 0 : index
    %1 = vector.load %arg1[%c0_1, %c0_2] : memref<128x128xbf16, #tpu.memory_space<vmem>>, vector<128x128xbf16>
    %c0_3 = arith.constant 0 : index
    %c0_4 = arith.constant 0 : index
    %c0_5 = arith.constant 0 : index
    %2 = vector.load %arg4[%c0_3, %c0_4, %c0_5] : memref<8x128x128xbf16, #tpu.memory_space<vmem>>, vector<1x128x128xbf16>
    %3 = vector.shape_cast %2 : vector<1x128x128xbf16> to vector<128x128xbf16>
    %c1 = arith.constant 1 : index
    %c0_6 = arith.constant 0 : index
    %c0_7 = arith.constant 0 : index
    %4 = vector.load %arg4[%c1, %c0_6, %c0_7] : memref<8x128x128xbf16, #tpu.memory_space<vmem>>, vector<1x128x128xbf16>
    %5 = vector.shape_cast %4 : vector<1x128x128xbf16> to vector<128x128xbf16>
    %c0_8 = arith.constant 0 : index
    %c0_9 = arith.constant 0 : index
    %6 = vector.load %arg5[%c0_8, %c0_9] : memref<14x128xf32, #tpu.memory_space<vmem>>, vector<1x128xf32>
    %c1_10 = arith.constant 1 : index
    %c0_11 = arith.constant 0 : index
    %7 = vector.load %arg5[%c1_10, %c0_11] : memref<14x128xf32, #tpu.memory_space<vmem>>, vector<1x128xf32>
    %c2 = arith.constant 2 : index
    %c0_12 = arith.constant 0 : index
    %8 = vector.load %arg5[%c2, %c0_12] : memref<14x128xf32, #tpu.memory_space<vmem>>, vector<1x128xf32>
    %c3 = arith.constant 3 : index
    %c0_13 = arith.constant 0 : index
    %9 = vector.load %arg5[%c3, %c0_13] : memref<14x128xf32, #tpu.memory_space<vmem>>, vector<1x128xf32>
    %cst = arith.constant dense<0.000000e+00> : vector<128x128xf32>
    %10 = tpu.matmul %0, %1, %cst {dimension_numbers = #tpu.dot_dimension_numbers<[1], [0], [0], [1], [0, 0, 1, 1], [], []>} : vector<128x128xbf16>, vector<128x128xbf16>, vector<128x128xf32> -> vector<128x128xf32>
    %11 = arith.extf %1 : vector<128x128xbf16> to vector<128x128xf32>
    %12 = arith.addf %10, %11 : vector<128x128xf32>
    %13 = arith.truncf %12 : vector<128x128xf32> to vector<128x128xbf16>
    %cst_14 = arith.constant dense<0.000000e+00> : vector<128x128xf32>
    %14 = tpu.matmul %13, %3, %cst_14 {dimension_numbers = #tpu.dot_dimension_numbers<[1], [0], [0], [1], [0, 0, 1, 1], [], []>} : vector<128x128xbf16>, vector<128x128xbf16>, vector<128x128xf32> -> vector<128x128xf32>
    %15 = vector.broadcast %6 : vector<1x128xf32> to vector<128x128xf32>
    %16 = arith.addf %14, %15 : vector<128x128xf32>
    %cst_15 = arith.constant 0.000000e+00 : f32
    %17 = vector.broadcast %cst_15 : f32 to vector<128x128xf32>
    %18 = arith.maximumf %16, %17 : vector<128x128xf32>
    %19 = arith.truncf %18 : vector<128x128xf32> to vector<128x128xbf16>
    %cst_16 = arith.constant dense<0.000000e+00> : vector<128x128xf32>
    %20 = tpu.matmul %19, %5, %cst_16 {dimension_numbers = #tpu.dot_dimension_numbers<[1], [0], [0], [1], [0, 0, 1, 1], [], []>} : vector<128x128xbf16>, vector<128x128xbf16>, vector<128x128xf32> -> vector<128x128xf32>
    %21 = vector.broadcast %7 : vector<1x128xf32> to vector<128x128xf32>
    %22 = arith.addf %20, %21 : vector<128x128xf32>
    %cst_17 = arith.constant 0.000000e+00 : f32
    %23 = vector.broadcast %cst_17 : f32 to vector<128x128xf32>
    %24 = arith.maximumf %22, %23 : vector<128x128xf32>
    %25 = vector.broadcast %8 : vector<1x128xf32> to vector<128x128xf32>
    %26 = arith.mulf %24, %25 : vector<128x128xf32>
    %27 = vector.broadcast %9 : vector<1x128xf32> to vector<128x128xf32>
    %28 = arith.addf %26, %27 : vector<128x128xf32>
    %29 = arith.truncf %28 : vector<128x128xf32> to vector<128x128xbf16>
    %c2_18 = arith.constant 2 : index
    %c0_19 = arith.constant 0 : index
    %c0_20 = arith.constant 0 : index
    %30 = vector.load %arg4[%c2_18, %c0_19, %c0_20] : memref<8x128x128xbf16, #tpu.memory_space<vmem>>, vector<1x128x128xbf16>
    %31 = vector.shape_cast %30 : vector<1x128x128xbf16> to vector<128x128xbf16>
    %c3_21 = arith.constant 3 : index
    %c0_22 = arith.constant 0 : index
    %c0_23 = arith.constant 0 : index
    %32 = vector.load %arg4[%c3_21, %c0_22, %c0_23] : memref<8x128x128xbf16, #tpu.memory_space<vmem>>, vector<1x128x128xbf16>
    %33 = vector.shape_cast %32 : vector<1x128x128xbf16> to vector<128x128xbf16>
    %c4 = arith.constant 4 : index
    %c0_24 = arith.constant 0 : index
    %34 = vector.load %arg5[%c4, %c0_24] : memref<14x128xf32, #tpu.memory_space<vmem>>, vector<1x128xf32>
    %c5 = arith.constant 5 : index
    %c0_25 = arith.constant 0 : index
    %35 = vector.load %arg5[%c5, %c0_25] : memref<14x128xf32, #tpu.memory_space<vmem>>, vector<1x128xf32>
    %c6 = arith.constant 6 : index
    %c0_26 = arith.constant 0 : index
    %36 = vector.load %arg5[%c6, %c0_26] : memref<14x128xf32, #tpu.memory_space<vmem>>, vector<1x128xf32>
    %c7 = arith.constant 7 : index
    %c0_27 = arith.constant 0 : index
    %37 = vector.load %arg5[%c7, %c0_27] : memref<14x128xf32, #tpu.memory_space<vmem>>, vector<1x128xf32>
    %cst_28 = arith.constant dense<0.000000e+00> : vector<128x128xf32>
    %38 = tpu.matmul %0, %29, %cst_28 {dimension_numbers = #tpu.dot_dimension_numbers<[1], [0], [0], [1], [0, 0, 1, 1], [], []>} : vector<128x128xbf16>, vector<128x128xbf16>, vector<128x128xf32> -> vector<128x128xf32>
    %39 = arith.extf %29 : vector<128x128xbf16> to vector<128x128xf32>
    %40 = arith.addf %38, %39 : vector<128x128xf32>
    %41 = arith.truncf %40 : vector<128x128xf32> to vector<128x128xbf16>
    %cst_29 = arith.constant dense<0.000000e+00> : vector<128x128xf32>
    %42 = tpu.matmul %41, %31, %cst_29 {dimension_numbers = #tpu.dot_dimension_numbers<[1], [0], [0], [1], [0, 0, 1, 1], [], []>} : vector<128x128xbf16>, vector<128x128xbf16>, vector<128x128xf32> -> vector<128x128xf32>
    %43 = vector.broadcast %34 : vector<1x128xf32> to vector<128x128xf32>
    %44 = arith.addf %42, %43 : vector<128x128xf32>
    %cst_30 = arith.constant 0.000000e+00 : f32
    %45 = vector.broadcast %cst_30 : f32 to vector<128x128xf32>
    %46 = arith.maximumf %44, %45 : vector<128x128xf32>
    %47 = arith.truncf %46 : vector<128x128xf32> to vector<128x128xbf16>
    %cst_31 = arith.constant dense<0.000000e+00> : vector<128x128xf32>
    %48 = tpu.matmul %47, %33, %cst_31 {dimension_numbers = #tpu.dot_dimension_numbers<[1], [0], [0], [1], [0, 0, 1, 1], [], []>} : vector<128x128xbf16>, vector<128x128xbf16>, vector<128x128xf32> -> vector<128x128xf32>
    %49 = vector.broadcast %35 : vector<1x128xf32> to vector<128x128xf32>
    %50 = arith.addf %48, %49 : vector<128x128xf32>
    %cst_32 = arith.constant 0.000000e+00 : f32
    %51 = vector.broadcast %cst_32 : f32 to vector<128x128xf32>
    %52 = arith.maximumf %50, %51 : vector<128x128xf32>
    %53 = vector.broadcast %36 : vector<1x128xf32> to vector<128x128xf32>
    %54 = arith.mulf %52, %53 : vector<128x128xf32>
    %55 = vector.broadcast %37 : vector<1x128xf32> to vector<128x128xf32>
    %56 = arith.addf %54, %55 : vector<128x128xf32>
    %57 = arith.truncf %56 : vector<128x128xf32> to vector<128x128xbf16>
    %c4_33 = arith.constant 4 : index
    %c0_34 = arith.constant 0 : index
    %c0_35 = arith.constant 0 : index
    %58 = vector.load %arg4[%c4_33, %c0_34, %c0_35] : memref<8x128x128xbf16, #tpu.memory_space<vmem>>, vector<1x128x128xbf16>
    %59 = vector.shape_cast %58 : vector<1x128x128xbf16> to vector<128x128xbf16>
    %c5_36 = arith.constant 5 : index
    %c0_37 = arith.constant 0 : index
    %c0_38 = arith.constant 0 : index
    %60 = vector.load %arg4[%c5_36, %c0_37, %c0_38] : memref<8x128x128xbf16, #tpu.memory_space<vmem>>, vector<1x128x128xbf16>
    %61 = vector.shape_cast %60 : vector<1x128x128xbf16> to vector<128x128xbf16>
    %c8 = arith.constant 8 : index
    %c0_39 = arith.constant 0 : index
    %62 = vector.load %arg5[%c8, %c0_39] : memref<14x128xf32, #tpu.memory_space<vmem>>, vector<1x128xf32>
    %c9 = arith.constant 9 : index
    %c0_40 = arith.constant 0 : index
    %63 = vector.load %arg5[%c9, %c0_40] : memref<14x128xf32, #tpu.memory_space<vmem>>, vector<1x128xf32>
    %c10 = arith.constant 10 : index
    %c0_41 = arith.constant 0 : index
    %64 = vector.load %arg5[%c10, %c0_41] : memref<14x128xf32, #tpu.memory_space<vmem>>, vector<1x128xf32>
    %c11 = arith.constant 11 : index
    %c0_42 = arith.constant 0 : index
    %65 = vector.load %arg5[%c11, %c0_42] : memref<14x128xf32, #tpu.memory_space<vmem>>, vector<1x128xf32>
    %cst_43 = arith.constant dense<0.000000e+00> : vector<128x128xf32>
    %66 = tpu.matmul %0, %57, %cst_43 {dimension_numbers = #tpu.dot_dimension_numbers<[1], [0], [0], [1], [0, 0, 1, 1], [], []>} : vector<128x128xbf16>, vector<128x128xbf16>, vector<128x128xf32> -> vector<128x128xf32>
    %67 = arith.extf %57 : vector<128x128xbf16> to vector<128x128xf32>
    %68 = arith.addf %66, %67 : vector<128x128xf32>
    %69 = arith.truncf %68 : vector<128x128xf32> to vector<128x128xbf16>
    %cst_44 = arith.constant dense<0.000000e+00> : vector<128x128xf32>
    %70 = tpu.matmul %69, %59, %cst_44 {dimension_numbers = #tpu.dot_dimension_numbers<[1], [0], [0], [1], [0, 0, 1, 1], [], []>} : vector<128x128xbf16>, vector<128x128xbf16>, vector<128x128xf32> -> vector<128x128xf32>
    %71 = vector.broadcast %62 : vector<1x128xf32> to vector<128x128xf32>
    %72 = arith.addf %70, %71 : vector<128x128xf32>
    %cst_45 = arith.constant 0.000000e+00 : f32
    %73 = vector.broadcast %cst_45 : f32 to vector<128x128xf32>
    %74 = arith.maximumf %72, %73 : vector<128x128xf32>
    %75 = arith.truncf %74 : vector<128x128xf32> to vector<128x128xbf16>
    %cst_46 = arith.constant dense<0.000000e+00> : vector<128x128xf32>
    %76 = tpu.matmul %75, %61, %cst_46 {dimension_numbers = #tpu.dot_dimension_numbers<[1], [0], [0], [1], [0, 0, 1, 1], [], []>} : vector<128x128xbf16>, vector<128x128xbf16>, vector<128x128xf32> -> vector<128x128xf32>
    %77 = vector.broadcast %63 : vector<1x128xf32> to vector<128x128xf32>
    %78 = arith.addf %76, %77 : vector<128x128xf32>
    %cst_47 = arith.constant 0.000000e+00 : f32
    %79 = vector.broadcast %cst_47 : f32 to vector<128x128xf32>
    %80 = arith.maximumf %78, %79 : vector<128x128xf32>
    %81 = vector.broadcast %64 : vector<1x128xf32> to vector<128x128xf32>
    %82 = arith.mulf %80, %81 : vector<128x128xf32>
    %83 = vector.broadcast %65 : vector<1x128xf32> to vector<128x128xf32>
    %84 = arith.addf %82, %83 : vector<128x128xf32>
    %85 = arith.truncf %84 : vector<128x128xf32> to vector<128x128xbf16>
    %c0_48 = arith.constant 0 : index
    %c0_49 = arith.constant 0 : index
    %86 = vector.load %arg2[%c0_48, %c0_49] : memref<8x128xbf16, #tpu.memory_space<vmem>>, vector<8x128xbf16>
    %cst_50 = arith.constant dense<0.000000e+00> : vector<8x128xf32>
    %87 = tpu.matmul %86, %85, %cst_50 {dimension_numbers = #tpu.dot_dimension_numbers<[1], [0], [0], [1], [0, 0, 1, 1], [], []>} : vector<8x128xbf16>, vector<128x128xbf16>, vector<8x128xf32> -> vector<8x128xf32>
    %c0_51 = arith.constant 0 : index
    %c0_52 = arith.constant 0 : index
    %88 = vector.load %arg3[%c0_51, %c0_52] : memref<8x1xf32, #tpu.memory_space<vmem>>, vector<8x1xf32>
    %89 = vector.broadcast %88 : vector<8x1xf32> to vector<8x128xf32>
    %90 = arith.mulf %87, %89 : vector<8x128xf32>
    %c6_53 = arith.constant 6 : index
    %c0_54 = arith.constant 0 : index
    %c0_55 = arith.constant 0 : index
    %91 = vector.load %arg4[%c6_53, %c0_54, %c0_55] : memref<8x128x128xbf16, #tpu.memory_space<vmem>>, vector<1x128x128xbf16>
    %92 = vector.shape_cast %91 : vector<1x128x128xbf16> to vector<128x128xbf16>
    %c7_56 = arith.constant 7 : index
    %c0_57 = arith.constant 0 : index
    %c0_58 = arith.constant 0 : index
    %93 = vector.load %arg4[%c7_56, %c0_57, %c0_58] : memref<8x128x128xbf16, #tpu.memory_space<vmem>>, vector<1x128x128xbf16>
    %94 = vector.shape_cast %93 : vector<1x128x128xbf16> to vector<128x128xbf16>
    %c12 = arith.constant 12 : index
    %c0_59 = arith.constant 0 : index
    %95 = vector.load %arg5[%c12, %c0_59] : memref<14x128xf32, #tpu.memory_space<vmem>>, vector<1x128xf32>
    %c13 = arith.constant 13 : index
    %c0_60 = arith.constant 0 : index
    %96 = vector.load %arg5[%c13, %c0_60] : memref<14x128xf32, #tpu.memory_space<vmem>>, vector<1x128xf32>
    %97 = arith.truncf %90 : vector<8x128xf32> to vector<8x128xbf16>
    %cst_61 = arith.constant dense<0.000000e+00> : vector<8x128xf32>
    %98 = tpu.matmul %97, %92, %cst_61 {dimension_numbers = #tpu.dot_dimension_numbers<[1], [0], [0], [1], [0, 0, 1, 1], [], []>} : vector<8x128xbf16>, vector<128x128xbf16>, vector<8x128xf32> -> vector<8x128xf32>
    %99 = vector.broadcast %95 : vector<1x128xf32> to vector<8x128xf32>
    %100 = arith.addf %98, %99 : vector<8x128xf32>
    %cst_62 = arith.constant 0.000000e+00 : f32
    %101 = vector.broadcast %cst_62 : f32 to vector<8x128xf32>
    %102 = arith.maximumf %100, %101 : vector<8x128xf32>
    %103 = arith.truncf %102 : vector<8x128xf32> to vector<8x128xbf16>
    %cst_63 = arith.constant dense<0.000000e+00> : vector<8x128xf32>
    %104 = tpu.matmul %103, %94, %cst_63 {dimension_numbers = #tpu.dot_dimension_numbers<[1], [0], [0], [1], [0, 0, 1, 1], [], []>} : vector<8x128xbf16>, vector<128x128xbf16>, vector<8x128xf32> -> vector<8x128xf32>
    %105 = vector.broadcast %96 : vector<1x128xf32> to vector<8x128xf32>
    %106 = arith.addf %104, %105 : vector<8x128xf32>
    %107 = tpu.iota {dimensions = array<i32: 1>} : vector<8x128xi32>
    %c4_i32 = arith.constant 4 : i32
    %108 = vector.broadcast %c4_i32 : i32 to vector<8x128xi32>
    %109 = arith.cmpi slt, %107, %108 : vector<8x128xi32>
    %cst_64 = arith.constant -1.000000e+30 : f32
    %110 = vector.broadcast %cst_64 : f32 to vector<8x128xf32>
    %111 = arith.select %109, %106, %110 : vector<8x128xi1>, vector<8x128xf32>
    %cst_65 = arith.constant dense<0xFF800000> : vector<8xf32>
    %112 = vector.multi_reduction <maximumf>, %111, %cst_65 [1] : vector<8x128xf32> to vector<8xf32>
    %113 = vector.shape_cast %112 : vector<8xf32> to vector<8x1xf32>
    %114 = vector.broadcast %113 : vector<8x1xf32> to vector<8x128xf32>
    %115 = arith.subf %111, %114 : vector<8x128xf32>
    %116 = math.exp %115 : vector<8x128xf32>
    %cst_66 = arith.constant dense<0.000000e+00> : vector<8xf32>
    %117 = vector.multi_reduction <add>, %116, %cst_66 [1] : vector<8x128xf32> to vector<8xf32>
    %118 = vector.shape_cast %117 : vector<8xf32> to vector<8x1xf32>
    %119 = math.log %118 : vector<8x1xf32>
    %120 = vector.broadcast %119 : vector<8x1xf32> to vector<8x128xf32>
    %121 = arith.subf %115, %120 : vector<8x128xf32>
    %c0_67 = arith.constant 0 : index
    %c0_68 = arith.constant 0 : index
    %122 = vector.load %arg6[%c0_67, %c0_68] : memref<8x128xf32, #tpu.memory_space<vmem>>, vector<8x128xf32>
    tpu.vector_store %arg6[%c0_67, %c0_68], %121 {strides = array<i32>} : memref<8x128xf32, #tpu.memory_space<vmem>>, vector<8x128xf32>,
    return
  }
}

</mosaic_0001>

<bundles_post_ra>
// kernel: gin0_forward.1
= control target key start
LH: loop header
LB: loop body
LE: loop exit
PB: predicated region body
PF: predicated region fallthrough
CT: control target
= control target key end

     0   :  { %vm2906_vm0 = vmmov 0   ;;  %s3626_s1 = inlined_call_operand.vmem [shape: bf16[128,128], index: 1, kind: input, shape index: {}]   ;;  %s3627_s0 = inlined_call_operand.vmem [shape: bf16[128,128], index: 0, kind: input, shape index: {}]   ;;  %s3628_s4 = inlined_call_operand.vmem [shape: bf16[8,128,128], index: 4, kind: input, shape index: {}]   ;;  %s3629_s5 = inlined_call_operand.vmem [shape: f32[14,128], index: 5, kind: input, shape index: {}]   ;;  %s3630_s3 = inlined_call_operand.vmem [shape: f32[8,1], index: 3, kind: input, shape index: {}]   ;;  %s3631_s2 = inlined_call_operand.vmem [shape: bf16[8,128], index: 2, kind: input, shape index: {}]   ;;  %s3632_s6 = inlined_call_operand.vmem [shape: f32[8,128], index: 6, kind: output, shape index: {}]  }
   0x1   :  { %v2946_v0 = vld [vmem:[%s3626_s1] sm:$0xff]   ;;  %v2951_v1 = vld [vmem:[%s3626_s1 + $0x8] sm:$0xff]   ;;  %v2956_v2 = vld [vmem:[%s3626_s1 + $0x10] sm:$0xff]  }
   0x2   :  { %2453 = vmatprep.subr.bf16.mxu0 %v2946_v0  ;;  %v2962_v3 = vld [vmem:[%s3627_s0] sm:$0xff]   ;;  %v2970_v4 = vld [vmem:[%s3626_s1 + $0x18] sm:$0xff]   ;;  %v2822_v7 = vld [vmem:[%s3628_s4 + $0x8] sm:$0xff]   ;;  %v95_v30 = vunpack.c.l.bf16 %v2951_v1  ;;  %v96_v31 = vunpack.c.h.bf16 %v2951_v1  ;;  %v93_v33 = vunpack.c.l.bf16 %v2946_v0  ;;  %v94_v34 = vunpack.c.h.bf16 %v2946_v0 }
   0x3   :  { %2454 = vmatpush3.bf16.msra.mxu0 %v2946_v0  ;;  %2469 = vmatprep.mubr.bf16.mxu0 %v2962_v3  ;;  %v2977_v5 = vld [vmem:[%s3626_s1 + $0x20] sm:$0xff]   ;;  %v2990_v8 = vld [vmem:[%s3626_s1 + $0x28] sm:$0xff]   ;;  %v2823_v9 = vld [vmem:[%s3628_s4 + $0x10] sm:$0xff]   ;;  %v99_v44 = vunpack.c.l.bf16 %v2970_v4  ;;  %v100_v45 = vunpack.c.h.bf16 %v2970_v4  ;;  %v97_v47 = vunpack.c.l.bf16 %v2956_v2  ;;  %v98_v48 = vunpack.c.h.bf16 %v2956_v2 }
   0x4   :  { %2455 = vmatprep.subr.bf16.mxu0 %v2951_v1  ;;  %v2821_v6 = vld [vmem:[%s3628_s4] sm:$0xff]   ;;  %v2999_v10 = vld [vmem:[%s3626_s1 + $0x30] sm:$0xff]   ;;  %v2824_v11 = vld [vmem:[%s3628_s4 + $0x18] sm:$0xff]   ;;  %v103_v58 = vunpack.c.l.bf16 %v2990_v8  ;;  %v104_v59 = vunpack.c.h.bf16 %v2990_v8  ;;  %v101_v61 = vunpack.c.l.bf16 %v2977_v5  ;;  %v102_v62 = vunpack.c.h.bf16 %v2977_v5 }
   0x5   :  { %2485 = vmatprep.subr.bf16.mxu1 %v2821_v6  ;;  %v3009_v12 = vld [vmem:[%s3626_s1 + $0x38] sm:$0xff]   ;;  %v2825_v13 = vld [vmem:[%s3628_s4 + $0x20] sm:$0xff]   ;;  %v2826_v14 = vld [vmem:[%s3628_s4 + $0x28] sm:$0xff]  }
   0x6   :  { %2486 = vmatpush3.bf16.msra.mxu1 %v2821_v6  ;;  %v3025_v15 = vld [vmem:[%s3627_s0 + $0x8] sm:$0xff]   ;;  %v3030_v16 = vld [vmem:[%s3627_s0 + $0x10] sm:$0xff]   ;;  %v3038_v17 = vld [vmem:[%s3627_s0 + $0x18] sm:$0xff]  }
   0x7   :  { %2456 = vmatpush3.bf16.msra.mxu0 %v2951_v1  ;;  %2487 = vmatprep.subr.bf16.mxu1 %v2822_v7  ;;  %v3043_v18 = vld [vmem:[%s3627_s0 + $0x20] sm:$0xff]   ;;  %v3050_v19 = vld [vmem:[%s3627_s0 + $0x28] sm:$0xff]   ;;  %v3055_v20 = vld [vmem:[%s3627_s0 + $0x30] sm:$0xff]  }
   0x8   :  { %2457 = vmatprep.subr.bf16.mxu0 %v2956_v2  ;;  %v3062_v21 = vld [vmem:[%s3627_s0 + $0x38] sm:$0xff]   ;;  %v2827_v22 = vld [vmem:[%s3628_s4 + $0x30] sm:$0xff]   ;;  %v2829_v24 = vld [vmem:[%s3628_s4 + $0x40] sm:$0xff]  }
   0x9   :  { %v2828_v23 = vld [vmem:[%s3628_s4 + $0x38] sm:$0xff]   ;;  %v2830_v25 = vld [vmem:[%s3628_s4 + $0x48] sm:$0xff]   ;;  %v2831_v26 = vld [vmem:[%s3628_s4 + $0x50] sm:$0xff]  }
   0xa   :  { %2488 = vmatpush3.bf16.msra.mxu1 %v2822_v7  ;;  %v2832_v27 = vld [vmem:[%s3628_s4 + $0x58] sm:$0xff]   ;;  %v2833_v28 = vld [vmem:[%s3628_s4 + $0x60] sm:$0xff]   ;;  %v2834_v29 = vld [vmem:[%s3628_s4 + $0x68] sm:$0xff]  }
   0xb   :  { %2458 = vmatpush3.bf16.msra.mxu0 %v2956_v2  ;;  %2489 = vmatprep.subr.bf16.mxu1 %v2823_v9 }
   0xc   :  { %2459 = vmatprep.subr.bf16.mxu0 %v2970_v4 }
   0xe   :  { %2490 = vmatpush3.bf16.msra.mxu1 %v2823_v9 }
   0xf   :  { %2460 = vmatpush3.bf16.msra.mxu0 %v2970_v4  ;;  %2491 = vmatprep.subr.bf16.mxu1 %v2824_v11 }
  0x10   :  { %2461 = vmatprep.subr.bf16.mxu0 %v2977_v5 }
  0x12   :  { %2492 = vmatpush3.bf16.msra.mxu1 %v2824_v11 }
  0x13   :  { %2462 = vmatpush3.bf16.msra.mxu0 %v2977_v5  ;;  %2493 = vmatprep.subr.bf16.mxu1 %v2825_v13  ;;  %v106_v5 = vunpack.c.h.bf16 %v2999_v10 }
  0x14   :  { %2463 = vmatprep.subr.bf16.mxu0 %v2990_v8 }
  0x16   :  { %2494 = vmatpush3.bf16.msra.mxu1 %v2825_v13  ;;  %v107_v13 = vunpack.c.l.bf16 %v3009_v12 }
  0x17   :  { %2464 = vmatpush3.bf16.msra.mxu0 %v2990_v8  ;;  %2495 = vmatprep.subr.bf16.mxu1 %v2826_v14  ;;  %v108_v8 = vunpack.c.h.bf16 %v3009_v12 }
  0x18   :  { %2465 = vmatprep.subr.bf16.mxu0 %v2999_v10 }
  0x1a   :  { %2496 = vmatpush3.bf16.msra.mxu1 %v2826_v14 }
  0x1b   :  { %2466 = vmatpush3.bf16.msra.mxu0 %v2999_v10  ;;  %2497 = vmatprep.subr.bf16.mxu1 %v2827_v22 }
  0x1c   :  { %2467 = vmatprep.subr.bf16.mxu0 %v3009_v12 }
  0x1e   :  { %2498 = vmatpush3.bf16.msra.mxu1 %v2827_v22  ;;  %v105_v22 = vunpack.c.l.bf16 %v2999_v10  ;;  %v2836_v10 = vld [vmem:[%s3628_s4 + $0x78] sm:$0xff]  }
  0x1f   :  { %2468 = vmatpush3.bf16.msra.mxu0 %v3009_v12  ;;  %2499 = vmatprep.subr.bf16.mxu1 %v2828_v23  ;;  %v2835_v12 = vld [vmem:[%s3628_s4 + $0x70] sm:$0xff]  }
  0x20   :  { %2517 = vmatprep.subr.bf16.mxu0 %v2829_v24 }
  0x22   :  { %2470 = vmatmul.mubr.bf16.vlgmr.msra.gmra.mrb[0].mxu0 %v3025_v15  ;;  %2500 = vmatpush3.bf16.msra.mxu1 %v2828_v23 }
  0x23   :  { %2473 = vmatprep.mubr.bf16.mxu0 %v3030_v16  ;;  %2518 = vmatpush3.bf16.msra.mxu0 %v2829_v24 }
  0x24   :  { %2519 = vmatprep.subr.bf16.mxu0 %v2830_v25 }
  0x27   :  { %2520 = vmatpush3.bf16.msra.mxu0 %v2830_v25 }
  0x28   :  { %2521 = vmatprep.subr.bf16.mxu0 %v2831_v26 }
  0x2a   :  { %2474 = vmatmul.mubr.bf16.gmra.mrb[4].mxu0 %v3038_v17 }
  0x2b   :  { %2477 = vmatprep.mubr.bf16.mxu0 %v3043_v18  ;;  %2522 = vmatpush3.bf16.msra.mxu0 %v2831_v26 }
  0x2c   :  { %2523 = vmatprep.subr.bf16.mxu0 %v2832_v27 }
  0x2f   :  { %2524 = vmatpush3.bf16.msra.mxu0 %v2832_v27 }
  0x30   :  { %2525 = vmatprep.subr.bf16.mxu0 %v2833_v28 }
  0x32   :  { %2478 = vmatmul.mubr.bf16.gmra.mrb[8].mxu0 %v3050_v19 }
  0x33   :  { %2481 = vmatprep.mubr.bf16.mxu0 %v3055_v20  ;;  %2526 = vmatpush3.bf16.msra.mxu0 %v2833_v28 }
  0x34   :  { %2527 = vmatprep.subr.bf16.mxu0 %v2834_v29 }
  0x37   :  { %2528 = vmatpush3.bf16.msra.mxu0 %v2834_v29 }
  0x38   :  { %2529 = vmatprep.subr.bf16.mxu0 %v2835_v12 }
  0x3a   :  { %2482 = vmatmul.mubr.bf16.gmra.mrb[12].mxu0 %v3062_v21 }
  0x3b   :  { %2530 = vmatpush3.bf16.msra.mxu0 %v2835_v12 }
  0x3c   :  { %2531 = vmatprep.subr.bf16.mxu0 %v2836_v10 }
  0x3f   :  { %2532 = vmatpush3.bf16.msra.mxu0 %v2836_v10 }
  0xf5   :  { %v2471_v32 = vpop.f32.mrb[0].mxu0 }
  0xf6   :  { %v239_v35 = vpop.f32.mrb[1].mxu0  ;;  %v248_v37 = vadd.f32 %v2471_v32, %v95_v30  ;;  %v2108_v32 = vld [vmem:[%s3629_s5] ss:$0 sm:$0xff] }
  0xf7   :  { %v2472_v36 = vpop.f32.mrb[2].mxu0  ;;  %v240_v40 = vadd.f32 %v239_v35, %v93_v33 }
  0xf8   :  { %v251_v38 = vadd.f32 %v2472_v36, %v96_v31  ;;  %v242_v39 = vpop.f32.mrb[3].mxu0 }
  0xf9   :  { %v243_v41 = vadd.f32 %v242_v39, %v94_v34 }
  0xfa   :  { %v303_v42 = vpack.c.bf16 %v251_v38, %v248_v37 }
  0xfb   :  { %v302_v43 = vpack.c.bf16 %v243_v41, %v240_v40 }
  0xfd   :  { %v2475_v46 = vpop.f32.mrb[4].mxu0  ;;  %2501 = vmatprep.mubr.bf16.mxu1 %v302_v43 }
  0xfe   :  { %v255_v49 = vpop.f32.mrb[5].mxu0  ;;  %2502 = vmatmul.mubr.bf16.vlgmr.msra.gmra.mrb[0].mxu1 %v303_v42  ;;  %v264_v51 = vadd.f32 %v2475_v46, %v99_v44 }
  0xff   :  { %v2476_v50 = vpop.f32.mrb[6].mxu0  ;;  %v256_v54 = vadd.f32 %v255_v49, %v97_v47 }
 0x100   :  { %v267_v52 = vadd.f32 %v2476_v50, %v100_v45  ;;  %v258_v53 = vpop.f32.mrb[7].mxu0 }
 0x101   :  { %v259_v55 = vadd.f32 %v258_v53, %v98_v48 }
 0x102   :  { %v305_v56 = vpack.c.bf16 %v267_v52, %v264_v51 }
 0x103   :  { %v304_v57 = vpack.c.bf16 %v259_v55, %v256_v54 }
 0x105   :  { %v2479_v60 = vpop.f32.mrb[8].mxu0  ;;  %2505 = vmatprep.mubr.bf16.mxu1 %v304_v57 }
 0x106   :  { %v271_v63 = vpop.f32.mrb[9].mxu0  ;;  %2506 = vmatmul.mubr.bf16.gmra.mrb[4].mxu1 %v305_v56  ;;  %v280_v1 = vadd.f32 %v2479_v60, %v103_v58 }
 0x107   :  { %v2480_v0 = vpop.f32.mrb[10].mxu0  ;;  %v272_v6 = vadd.f32 %v271_v63, %v101_v61 }
 0x108   :  { %v283_v2 = vadd.f32 %v2480_v0, %v104_v59  ;;  %v274_v4 = vpop.f32.mrb[11].mxu0 }
 0x109   :  { %v275_v7 = vadd.f32 %v274_v4, %v102_v62 }
 0x10a   :  { %v307_v9 = vpack.c.bf16 %v283_v2, %v280_v1 }
 0x10b   :  { %v306_v11 = vpack.c.bf16 %v275_v7, %v272_v6 }
 0x10d   :  { %v2483_v14 = vpop.f32.mrb[12].mxu0  ;;  %2509 = vmatprep.mubr.bf16.mxu1 %v306_v11 }
 0x10e   :  { %v287_v23 = vpop.f32.mrb[13].mxu0  ;;  %2510 = vmatmul.mubr.bf16.gmra.mrb[8].mxu1 %v307_v9  ;;  %v296_v25 = vadd.f32 %v2483_v14, %v107_v13 }
 0x10f   :  { %v2484_v24 = vpop.f32.mrb[14].mxu0  ;;  %v288_v28 = vadd.f32 %v287_v23, %v105_v22 }
 0x110   :  { %v299_v26 = vadd.f32 %v2484_v24, %v108_v8  ;;  %v290_v27 = vpop.f32.mrb[15].mxu0 }
 0x111   :  { %v291_v29 = vadd.f32 %v290_v27, %v106_v5 }
 0x112   :  { %v309_v30 = vpack.c.bf16 %v299_v26, %v296_v25 }
 0x113   :  { %v308_v31 = vpack.c.bf16 %v291_v29, %v288_v28 }
 0x115   :  { %2513 = vmatprep.mubr.bf16.mxu1 %v308_v31 }
 0x116   :  { %2514 = vmatmul.mubr.bf16.gmra.mrb[12].mxu1 %v309_v30 }
 0x117   :  { %2565 = vmatprep.mubr.bf16.mxu1 %v2962_v3 }
 0x1d1   :  { %v2503_v33 = vpop.f32.mrb[0].mxu1 }
 0x1d2   :  { %v405_v34 = vadd.f32 %v2503_v33, %v2108_v32  ;;  %v396_v35 = vpop.f32.mrb[1].mxu1  ;;  %v2837_v33 = vld [vmem:[%s3628_s4 + $0x80] sm:$0xff]  }
 0x1d3   :  { %v397_v3 = vadd.f32 %v2108_v32, %v396_v35  ;;  %v2504_v36 = vpop.f32.mrb[2].mxu1  ;;  %2581 = vmatprep.subr.bf16.mxu0 %v2837_v33  ;;  %v2840_v35 = vld [vmem:[%s3628_s4 + $0x98] sm:$0xff]  }
 0x1d4   :  { %v408_v37 = vadd.f32 %v2504_v36, %v2108_v32  ;;  %v399_v38 = vpop.f32.mrb[3].mxu1  ;;  %v461_v40 = vmax.f32 %v405_v34, 0.0  ;;  %v2838_v34 = vld [vmem:[%s3628_s4 + $0x88] sm:$0xff]  }
 0x1d5   :  { %v400_v39 = vadd.f32 %v2108_v32, %v399_v38  ;;  %v459_v42 = vmax.f32 %v397_v3, 0.0  ;;  %v2841_v3 = vld [vmem:[%s3628_s4 + $0xa0] sm:$0xff]   ;;  %v2842_v36 = vld [vmem:[%s3628_s4 + $0xa8] sm:$0xff]  }
 0x1d6   :  { %v462_v41 = vmax.f32 %v408_v37, 0.0  ;;  %v3136_v37 = vld [vmem:[%s3629_s5 + $0x1] ss:$0 sm:$0xff] }
 0x1d7   :  { %v460_v43 = vmax.f32 %v400_v39, 0.0 }
 0x1d8   :  { %v476_v44 = vpack.c.bf16 %v462_v41, %v461_v40  ;;  %v3142_v41 = vld [vmem:[%s3629_s5 + $0x2] ss:$0 sm:$0xff] }
 0x1d9   :  { %v475_v45 = vpack.c.bf16 %v460_v43, %v459_v42  ;;  %v2507_v46 = vpop.f32.mrb[4].mxu1 }
 0x1da   :  { %v421_v47 = vadd.f32 %v2507_v46, %v2108_v32  ;;  %v412_v48 = vpop.f32.mrb[5].mxu1 }
 0x1db   :  { %v413_v49 = vadd.f32 %v2108_v32, %v412_v48  ;;  %v2508_v50 = vpop.f32.mrb[6].mxu1  ;;  %2533 = vmatprep.mubr.bf16.mxu0 %v475_v45 }
 0x1dc   :  { %v424_v51 = vadd.f32 %v2508_v50, %v2108_v32  ;;  %v415_v52 = vpop.f32.mrb[7].mxu1  ;;  %2534 = vmatmul.mubr.bf16.vlgmr.msra.gmra.mrb[16].mxu0 %v476_v44  ;;  %v465_v54 = vmax.f32 %v421_v47, 0.0 }
 0x1dd   :  { %v416_v53 = vadd.f32 %v2108_v32, %v415_v52  ;;  %v463_v56 = vmax.f32 %v413_v49, 0.0  ;;  %2582 = vmatpush3.bf16.msra.mxu0 %v2837_v33 }
 0x1de   :  { %v466_v55 = vmax.f32 %v424_v51, 0.0  ;;  %2583 = vmatprep.subr.bf16.mxu0 %v2838_v34  ;;  %v3151_v51 = vld [vmem:[%s3629_s5 + $0x3] ss:$0 sm:$0xff] }
 0x1df   :  { %v464_v57 = vmax.f32 %v416_v53, 0.0 }
 0x1e0   :  { %v478_v58 = vpack.c.bf16 %v466_v55, %v465_v54 }
 0x1e1   :  { %v477_v59 = vpack.c.bf16 %v464_v57, %v463_v56  ;;  %v2511_v60 = vpop.f32.mrb[8].mxu1  ;;  %2584 = vmatpush3.bf16.msra.mxu0 %v2838_v34 }
 0x1e2   :  { %v437_v61 = vadd.f32 %v2511_v60, %v2108_v32  ;;  %v428_v62 = vpop.f32.mrb[9].mxu1 }
 0x1e3   :  { %v429_v63 = vadd.f32 %v2108_v32, %v428_v62  ;;  %v2512_v0 = vpop.f32.mrb[10].mxu1  ;;  %2537 = vmatprep.mubr.bf16.mxu0 %v477_v59 }
 0x1e4   :  { %v440_v1 = vadd.f32 %v2512_v0, %v2108_v32  ;;  %v431_v2 = vpop.f32.mrb[11].mxu1  ;;  %2538 = vmatmul.mubr.bf16.gmra.mrb[20].mxu0 %v478_v58  ;;  %v469_v6 = vmax.f32 %v437_v61, 0.0 }
 0x1e5   :  { %v432_v4 = vadd.f32 %v2108_v32, %v431_v2  ;;  %v467_v9 = vmax.f32 %v429_v63, 0.0 }
 0x1e6   :  { %v470_v7 = vmax.f32 %v440_v1, 0.0 }
 0x1e7   :  { %v468_v11 = vmax.f32 %v432_v4, 0.0 }
 0x1e8   :  { %v480_v13 = vpack.c.bf16 %v470_v7, %v469_v6 }
 0x1e9   :  { %v479_v8 = vpack.c.bf16 %v468_v11, %v467_v9  ;;  %v2515_v14 = vpop.f32.mrb[12].mxu1 }
 0x1ea   :  { %v453_v22 = vadd.f32 %v2515_v14, %v2108_v32  ;;  %v444_v5 = vpop.f32.mrb[13].mxu1 }
 0x1eb   :  { %v445_v23 = vadd.f32 %v2108_v32, %v444_v5  ;;  %v2516_v24 = vpop.f32.mrb[14].mxu1  ;;  %2541 = vmatprep.mubr.bf16.mxu0 %v479_v8 }
 0x1ec   :  { %v456_v25 = vadd.f32 %v2516_v24, %v2108_v32  ;;  %v447_v26 = vpop.f32.mrb[15].mxu1  ;;  %2542 = vmatmul.mubr.bf16.gmra.mrb[24].mxu0 %v480_v13  ;;  %v473_v28 = vmax.f32 %v453_v22, 0.0 }
 0x1ed   :  { %v448_v27 = vadd.f32 %v2108_v32, %v447_v26  ;;  %v471_v30 = vmax.f32 %v445_v23, 0.0  ;;  %v2839_v32 = vld [vmem:[%s3628_s4 + $0x90] sm:$0xff]  }
 0x1ee   :  { %v474_v29 = vmax.f32 %v456_v25, 0.0  ;;  %2585 = vmatprep.subr.bf16.mxu0 %v2839_v32 }
 0x1ef   :  { %v472_v31 = vmax.f32 %v448_v27, 0.0  ;;  %2586 = vmatpush3.bf16.msra.mxu0 %v2839_v32 }
 0x1f0   :  { %v482_v12 = vpack.c.bf16 %v474_v29, %v473_v28  ;;  %2587 = vmatprep.subr.bf16.mxu0 %v2840_v35 }
 0x1f1   :  { %v481_v10 = vpack.c.bf16 %v472_v31, %v471_v30 }
 0x1f3   :  { %2545 = vmatprep.mubr.bf16.mxu0 %v481_v10  ;;  %2588 = vmatpush3.bf16.msra.mxu0 %v2840_v35 }
 0x1f4   :  { %2546 = vmatmul.mubr.bf16.gmra.mrb[28].mxu0 %v482_v12  ;;  %2589 = vmatprep.subr.bf16.mxu0 %v2841_v3 }
 0x1f7   :  { %2590 = vmatpush3.bf16.msra.mxu0 %v2841_v3 }
 0x1f8   :  { %2591 = vmatprep.subr.bf16.mxu0 %v2842_v36 }
 0x1fb   :  { %2592 = vmatpush3.bf16.msra.mxu0 %v2842_v36 }
 0x2af   :  { %v2535_v38 = vpop.f32.mrb[16].mxu0 }
 0x2b0   :  { %v578_v39 = vadd.f32 %v2535_v38, %v3136_v37  ;;  %v569_v40 = vpop.f32.mrb[17].mxu0 }
 0x2b1   :  { %v570_v42 = vadd.f32 %v3136_v37, %v569_v40  ;;  %v2536_v43 = vpop.f32.mrb[18].mxu0 }
 0x2b2   :  { %v634_v44 = vmax.f32 %v578_v39, 0.0  ;;  %v581_v45 = vadd.f32 %v2536_v43, %v3136_v37  ;;  %v572_v46 = vpop.f32.mrb[19].mxu0 }
 0x2b3   :  { %v632_v47 = vmax.f32 %v570_v42, 0.0  ;;  %v573_v48 = vadd.f32 %v3136_v37, %v572_v46 }
 0x2b4   :  { %v654_v49 = vmul.f32 %v3142_v41, %v634_v44  ;;  %v635_v50 = vmax.f32 %v581_v45, 0.0 }
 0x2b5   :  { %v652_v52 = vmul.f32 %v3142_v41, %v632_v47  ;;  %v633_v53 = vmax.f32 %v573_v48, 0.0 }
 0x2b6   :  { %v655_v54 = vmul.f32 %v3142_v41, %v635_v50  ;;  %v674_v57 = vadd.f32 %v3151_v51, %v654_v49 }
 0x2b7   :  { %v653_v55 = vmul.f32 %v3142_v41, %v633_v53  ;;  %v2539_v56 = vpop.f32.mrb[20].mxu0  ;;  %v672_v61 = vadd.f32 %v3151_v51, %v652_v52 }
 0x2b8   :  { %v675_v58 = vadd.f32 %v3151_v51, %v655_v54  ;;  %v594_v59 = vadd.f32 %v2539_v56, %v3136_v37  ;;  %v585_v60 = vpop.f32.mrb[21].mxu0 }
 0x2b9   :  { %v673_v62 = vadd.f32 %v3151_v51, %v653_v55  ;;  %v586_v63 = vadd.f32 %v3136_v37, %v585_v60  ;;  %v2540_v0 = vpop.f32.mrb[22].mxu0 }
 0x2ba   :  { %v3162_v1 = vpack.c.bf16 %v675_v58, %v674_v57  ;;  %v638_v2 = vmax.f32 %v594_v59, 0.0  ;;  %v597_v4 = vadd.f32 %v2540_v0, %v3136_v37  ;;  %v588_v6 = vpop.f32.mrb[23].mxu0 }
 0x2bb   :  { %v3165_v7 = vpack.c.bf16 %v673_v62, %v672_v61  ;;  %v636_v9 = vmax.f32 %v586_v63, 0.0  ;;  %v589_v11 = vadd.f32 %v3136_v37, %v588_v6 }
 0x2bc   :  { %v658_v13 = vmul.f32 %v3142_v41, %v638_v2  ;;  %v639_v8 = vmax.f32 %v597_v4, 0.0 }
 0x2bd   :  { %v656_v14 = vmul.f32 %v3142_v41, %v636_v9  ;;  %v637_v22 = vmax.f32 %v589_v11, 0.0  ;;  %2549 = vmatprep.subr.bf16.mxu1 %v3165_v7 }
 0x2be   :  { %v659_v5 = vmul.f32 %v3142_v41, %v639_v8  ;;  %2550 = vmatpush3.bf16.msra.mxu1 %v3165_v7  ;;  %v678_v25 = vadd.f32 %v3151_v51, %v658_v13 }
 0x2bf   :  { %v657_v23 = vmul.f32 %v3142_v41, %v637_v22  ;;  %v2543_v24 = vpop.f32.mrb[24].mxu0  ;;  %2551 = vmatprep.subr.bf16.mxu1 %v3162_v1  ;;  %v676_v29 = vadd.f32 %v3151_v51, %v656_v14 }
 0x2c0   :  { %v679_v26 = vadd.f32 %v3151_v51, %v659_v5  ;;  %v610_v27 = vadd.f32 %v2543_v24, %v3136_v37  ;;  %v601_v28 = vpop.f32.mrb[25].mxu0  ;;  %v734_v5 = vunpack.c.l.bf16 %v3165_v7 }
 0x2c1   :  { %v677_v30 = vadd.f32 %v3151_v51, %v657_v23  ;;  %v602_v31 = vadd.f32 %v3136_v37, %v601_v28  ;;  %v2544_v12 = vpop.f32.mrb[26].mxu0  ;;  %v735_v28 = vunpack.c.h.bf16 %v3165_v7 }
 0x2c2   :  { %v3181_v10 = vpack.c.bf16 %v679_v26, %v678_v25  ;;  %v642_v33 = vmax.f32 %v610_v27, 0.0  ;;  %v613_v34 = vadd.f32 %v2544_v12, %v3136_v37  ;;  %v604_v32 = vpop.f32.mrb[27].mxu0  ;;  %2552 = vmatpush3.bf16.msra.mxu1 %v3162_v1  ;;  %v737_v25 = vunpack.c.h.bf16 %v3162_v1 }
 0x2c3   :  { %v3185_v35 = vpack.c.bf16 %v677_v30, %v676_v29  ;;  %v640_v3 = vmax.f32 %v602_v31, 0.0  ;;  %v605_v36 = vadd.f32 %v3136_v37, %v604_v32 }
 0x2c4   :  { %v662_v38 = vmul.f32 %v3142_v41, %v642_v33  ;;  %v643_v39 = vmax.f32 %v613_v34, 0.0  ;;  %v740_v34 = vunpack.c.l.bf16 %v3181_v10 }
 0x2c5   :  { %v660_v40 = vmul.f32 %v3142_v41, %v640_v3  ;;  %v641_v42 = vmax.f32 %v605_v36, 0.0  ;;  %2553 = vmatprep.subr.bf16.mxu1 %v3185_v35  ;;  %v738_v3 = vunpack.c.l.bf16 %v3185_v35  ;;  %v739_v7 = vunpack.c.h.bf16 %v3185_v35 }
 0x2c6   :  { %v663_v43 = vmul.f32 %v3142_v41, %v643_v39  ;;  %2554 = vmatpush3.bf16.msra.mxu1 %v3185_v35  ;;  %v682_v46 = vadd.f32 %v3151_v51, %v662_v38 }
 0x2c7   :  { %v661_v44 = vmul.f32 %v3142_v41, %v641_v42  ;;  %v2547_v45 = vpop.f32.mrb[28].mxu0  ;;  %2555 = vmatprep.subr.bf16.mxu1 %v3181_v10  ;;  %v680_v50 = vadd.f32 %v3151_v51, %v660_v40 }
 0x2c8   :  { %v683_v47 = vadd.f32 %v3151_v51, %v663_v43  ;;  %v626_v48 = vadd.f32 %v2547_v45, %v3136_v37  ;;  %v617_v49 = vpop.f32.mrb[29].mxu0 }
 0x2c9   :  { %v681_v52 = vadd.f32 %v3151_v51, %v661_v44  ;;  %v618_v53 = vadd.f32 %v3136_v37, %v617_v49  ;;  %v2548_v54 = vpop.f32.mrb[30].mxu0 }
 0x2ca   :  { %v3201_v55 = vpack.c.bf16 %v683_v47, %v682_v46  ;;  %v646_v56 = vmax.f32 %v626_v48, 0.0  ;;  %v629_v57 = vadd.f32 %v2548_v54, %v3136_v37  ;;  %v620_v58 = vpop.f32.mrb[31].mxu0  ;;  %2556 = vmatpush3.bf16.msra.mxu1 %v3181_v10 }
 0x2cb   :  { %v3205_v59 = vpack.c.bf16 %v681_v52, %v680_v50  ;;  %v644_v60 = vmax.f32 %v618_v53, 0.0  ;;  %v621_v61 = vadd.f32 %v3136_v37, %v620_v58 }
 0x2cc   :  { %v666_v62 = vmul.f32 %v3142_v41, %v646_v56  ;;  %v647_v63 = vmax.f32 %v629_v57, 0.0  ;;  %v744_v47 = vunpack.c.l.bf16 %v3201_v55 }
 0x2cd   :  { %v664_v0 = vmul.f32 %v3142_v41, %v644_v60  ;;  %v645_v2 = vmax.f32 %v621_v61, 0.0  ;;  %2557 = vmatprep.subr.bf16.mxu1 %v3205_v59  ;;  %v742_v49 = vunpack.c.l.bf16 %v3205_v59  ;;  %v743_v35 = vunpack.c.h.bf16 %v3205_v59 }
 0x2ce   :  { %v667_v4 = vmul.f32 %v3142_v41, %v647_v63  ;;  %2558 = vmatpush3.bf16.msra.mxu1 %v3205_v59  ;;  %v686_v9 = vadd.f32 %v3151_v51, %v666_v62 }
 0x2cf   :  { %v665_v6 = vmul.f32 %v3142_v41, %v645_v2  ;;  %2559 = vmatprep.subr.bf16.mxu1 %v3201_v55  ;;  %v684_v11 = vadd.f32 %v3151_v51, %v664_v0  ;;  %v2843_v41 = vld [vmem:[%s3628_s4 + $0xb0] sm:$0xff]  }
 0x2d0   :  { %v687_v37 = vadd.f32 %v3151_v51, %v667_v4  ;;  %2593 = vmatprep.subr.bf16.mxu0 %v2843_v41 }
 0x2d1   :  { %v685_v13 = vadd.f32 %v3151_v51, %v665_v6  ;;  %2594 = vmatpush3.bf16.msra.mxu0 %v2843_v41  ;;  %v736_v51 = vunpack.c.l.bf16 %v3162_v1  ;;  %v741_v1 = vunpack.c.h.bf16 %v3181_v10  ;;  %v745_v10 = vunpack.c.h.bf16 %v3201_v55 }
 0x2d2   :  { %v3219_v8 = vpack.c.bf16 %v687_v37, %v686_v9  ;;  %2560 = vmatpush3.bf16.msra.mxu1 %v3201_v55 }
 0x2d3   :  { %v3222_v14 = vpack.c.bf16 %v685_v13, %v684_v11 }
 0x2d4   :  { %v748_v62 = vunpack.c.l.bf16 %v3219_v8  ;;  %v749_v55 = vunpack.c.h.bf16 %v3219_v8 }
 0x2d5   :  { %2561 = vmatprep.subr.bf16.mxu1 %v3222_v14  ;;  %v746_v0 = vunpack.c.l.bf16 %v3222_v14  ;;  %v747_v59 = vunpack.c.h.bf16 %v3222_v14 }
 0x2d6   :  { %2562 = vmatpush3.bf16.msra.mxu1 %v3222_v14  ;;  %v2852_v14 = vld [vmem:[%s3628_s4 + $0xf8] sm:$0xff]  }
 0x2d7   :  { %2563 = vmatprep.subr.bf16.mxu1 %v3219_v8 }
 0x2da   :  { %2564 = vmatpush3.bf16.msra.mxu1 %v3219_v8  ;;  %v2851_v8 = vld [vmem:[%s3628_s4 + $0xf0] sm:$0xff]  }
 0x2dd   :  { %2566 = vmatmul.mubr.bf16.vlgmr.msra.gmra.mrb[16].mxu1 %v3025_v15  ;;  %v2844_v15 = vld [vmem:[%s3628_s4 + $0xb8] sm:$0xff]  }
 0x2de   :  { %2569 = vmatprep.mubr.bf16.mxu1 %v3030_v16  ;;  %2595 = vmatprep.subr.bf16.mxu0 %v2844_v15  ;;  %v2845_v16 = vld [vmem:[%s3628_s4 + $0xc0] sm:$0xff]  }
 0x2df   :  { %2596 = vmatpush3.bf16.msra.mxu0 %v2844_v15  ;;  %2613 = vmatprep.subr.bf16.mxu1 %v2845_v16 }
 0x2e0   :  { %2614 = vmatpush3.bf16.msra.mxu1 %v2845_v16  ;;  %v2897_v16 = vld [vmem:[%s3627_s0] sm:$0xff]  }
 0x2e5   :  { %2570 = vmatmul.mubr.bf16.gmra.mrb[20].mxu1 %v3038_v17  ;;  %v2846_v17 = vld [vmem:[%s3628_s4 + $0xc8] sm:$0xff]  }
 0x2e6   :  { %2573 = vmatprep.mubr.bf16.mxu1 %v3043_v18  ;;  %2615 = vmatprep.subr.bf16.mxu1 %v2846_v17  ;;  %v2847_v18 = vld [vmem:[%s3628_s4 + $0xd0] sm:$0xff]  }
 0x2e7   :  { %2616 = vmatpush3.bf16.msra.mxu1 %v2846_v17  ;;  %v2160_v17 = vld [vmem:[%s3629_s5 + $0x4] ss:$0 sm:$0xff] }
 0x2e8   :  { %2617 = vmatprep.subr.bf16.mxu1 %v2847_v18 }
 0x2eb   :  { %2618 = vmatpush3.bf16.msra.mxu1 %v2847_v18 }
 0x2ed   :  { %2574 = vmatmul.mubr.bf16.gmra.mrb[24].mxu1 %v3050_v19  ;;  %v2848_v19 = vld [vmem:[%s3628_s4 + $0xd8] sm:$0xff]  }
 0x2ee   :  { %2577 = vmatprep.mubr.bf16.mxu1 %v3055_v20  ;;  %2619 = vmatprep.subr.bf16.mxu1 %v2848_v19  ;;  %v2849_v20 = vld [vmem:[%s3628_s4 + $0xe0] sm:$0xff]  }
 0x2ef   :  { %2620 = vmatpush3.bf16.msra.mxu1 %v2848_v19 }
 0x2f0   :  { %2621 = vmatprep.subr.bf16.mxu1 %v2849_v20 }
 0x2f3   :  { %2622 = vmatpush3.bf16.msra.mxu1 %v2849_v20 }
 0x2f5   :  { %2578 = vmatmul.mubr.bf16.gmra.mrb[28].mxu1 %v3062_v21  ;;  %v2850_v21 = vld [vmem:[%s3628_s4 + $0xe8] sm:$0xff]  }
 0x2f6   :  { %2623 = vmatprep.subr.bf16.mxu1 %v2850_v21 }
 0x2f7   :  { %2624 = vmatpush3.bf16.msra.mxu1 %v2850_v21 }
 0x2f8   :  { %2625 = vmatprep.subr.bf16.mxu1 %v2851_v8 }
 0x2fb   :  { %2626 = vmatpush3.bf16.msra.mxu1 %v2851_v8  ;;  %v2858_v8 = vld [vmem:[%s3628_s4 + $0x128] sm:$0xff]  }
 0x2fc   :  { %2627 = vmatprep.subr.bf16.mxu1 %v2852_v14 }
 0x2ff   :  { %2628 = vmatpush3.bf16.msra.mxu1 %v2852_v14  ;;  %v3308_v14 = vld [vmem:[%s3629_s5 + $0x5] ss:$0 sm:$0xff] }
 0x3b0   :  { %v2567_v22 = vpop.f32.mrb[16].mxu1 }
 0x3b1   :  { %v793_v23 = vadd.f32 %v2567_v22, %v736_v51  ;;  %v784_v24 = vpop.f32.mrb[17].mxu1 }
 0x3b2   :  { %v785_v26 = vadd.f32 %v784_v24, %v734_v5  ;;  %v2568_v27 = vpop.f32.mrb[18].mxu1 }
 0x3b3   :  { %v796_v29 = vadd.f32 %v2568_v27, %v737_v25  ;;  %v787_v30 = vpop.f32.mrb[19].mxu1 }
 0x3b4   :  { %v788_v31 = vadd.f32 %v787_v30, %v735_v28 }
 0x3b5   :  { %v848_v12 = vpack.c.bf16 %v796_v29, %v793_v23 }
 0x3b6   :  { %v847_v33 = vpack.c.bf16 %v788_v31, %v785_v26 }
 0x3b8   :  { %v2571_v32 = vpop.f32.mrb[20].mxu1  ;;  %2597 = vmatprep.mubr.bf16.mxu0 %v847_v33 }
 0x3b9   :  { %v809_v36 = vadd.f32 %v2571_v32, %v740_v34  ;;  %v800_v38 = vpop.f32.mrb[21].mxu1  ;;  %2598 = vmatmul.mubr.bf16.vlgmr.msra.gmra.mrb[32].mxu0 %v848_v12 }
 0x3ba   :  { %v801_v39 = vadd.f32 %v800_v38, %v738_v3  ;;  %v2572_v40 = vpop.f32.mrb[22].mxu1 }
 0x3bb   :  { %v812_v42 = vadd.f32 %v2572_v40, %v741_v1  ;;  %v803_v43 = vpop.f32.mrb[23].mxu1 }
 0x3bc   :  { %v804_v44 = vadd.f32 %v803_v43, %v739_v7 }
 0x3bd   :  { %v850_v45 = vpack.c.bf16 %v812_v42, %v809_v36 }
 0x3be   :  { %v849_v46 = vpack.c.bf16 %v804_v44, %v801_v39 }
 0x3c0   :  { %v2575_v48 = vpop.f32.mrb[24].mxu1  ;;  %2601 = vmatprep.mubr.bf16.mxu0 %v849_v46 }
 0x3c1   :  { %v825_v50 = vadd.f32 %v2575_v48, %v744_v47  ;;  %v816_v52 = vpop.f32.mrb[25].mxu1  ;;  %2602 = vmatmul.mubr.bf16.gmra.mrb[36].mxu0 %v850_v45 }
 0x3c2   :  { %v817_v53 = vadd.f32 %v816_v52, %v742_v49  ;;  %v2576_v54 = vpop.f32.mrb[26].mxu1 }
 0x3c3   :  { %v828_v56 = vadd.f32 %v2576_v54, %v745_v10  ;;  %v819_v57 = vpop.f32.mrb[27].mxu1 }
 0x3c4   :  { %v820_v58 = vadd.f32 %v819_v57, %v743_v35 }
 0x3c5   :  { %v852_v60 = vpack.c.bf16 %v828_v56, %v825_v50 }
 0x3c6   :  { %v851_v61 = vpack.c.bf16 %v820_v58, %v817_v53 }
 0x3c8   :  { %v2579_v63 = vpop.f32.mrb[28].mxu1  ;;  %2605 = vmatprep.mubr.bf16.mxu0 %v851_v61 }
 0x3c9   :  { %v841_v2 = vadd.f32 %v2579_v63, %v748_v62  ;;  %v832_v4 = vpop.f32.mrb[29].mxu1  ;;  %2606 = vmatmul.mubr.bf16.gmra.mrb[40].mxu0 %v852_v60 }
 0x3ca   :  { %v833_v6 = vadd.f32 %v832_v4, %v746_v0  ;;  %v2580_v9 = vpop.f32.mrb[30].mxu1 }
 0x3cb   :  { %v844_v37 = vadd.f32 %v2580_v9, %v749_v55  ;;  %v835_v11 = vpop.f32.mrb[31].mxu1 }
 0x3cc   :  { %v836_v13 = vadd.f32 %v835_v11, %v747_v59  ;;  %v2853_v11 = vld [vmem:[%s3628_s4 + $0x100] sm:$0xff]  }
 0x3cd   :  { %v854_v41 = vpack.c.bf16 %v844_v37, %v841_v2  ;;  %2677 = vmatprep.subr.bf16.mxu1 %v2853_v11 }
 0x3ce   :  { %v853_v15 = vpack.c.bf16 %v836_v13, %v833_v6  ;;  %v2854_v13 = vld [vmem:[%s3628_s4 + $0x108] sm:$0xff]  }
 0x3d0   :  { %2609 = vmatprep.mubr.bf16.mxu0 %v853_v15  ;;  %v2856_v15 = vld [vmem:[%s3628_s4 + $0x118] sm:$0xff]  }
 0x3d1   :  { %2610 = vmatmul.mubr.bf16.gmra.mrb[44].mxu0 %v854_v41  ;;  %v2855_v41 = vld [vmem:[%s3628_s4 + $0x110] sm:$0xff]  }
 0x3d2   :  { %2661 = vmatprep.mubr.bf16.mxu0 %v2897_v16  ;;  %v2857_v16 = vld [vmem:[%s3628_s4 + $0x120] sm:$0xff]  }
 0x48c   :  { %v2599_v18 = vpop.f32.mrb[32].mxu0 }
 0x48d   :  { %v950_v19 = vadd.f32 %v2599_v18, %v2160_v17  ;;  %v941_v20 = vpop.f32.mrb[33].mxu0 }
 0x48e   :  { %v942_v21 = vadd.f32 %v2160_v17, %v941_v20  ;;  %v2600_v51 = vpop.f32.mrb[34].mxu0  ;;  %v3314_v20 = vld [vmem:[%s3629_s5 + $0x6] ss:$0 sm:$0xff] }
 0x48f   :  { %v953_v22 = vadd.f32 %v2600_v51, %v2160_v17  ;;  %v944_v5 = vpop.f32.mrb[35].mxu0  ;;  %v1006_v24 = vmax.f32 %v950_v19, 0.0 }
 0x490   :  { %v945_v23 = vadd.f32 %v2160_v17, %v944_v5  ;;  %v1004_v26 = vmax.f32 %v942_v21, 0.0 }
 0x491   :  { %v1007_v25 = vmax.f32 %v953_v22, 0.0 }
 0x492   :  { %v1005_v27 = vmax.f32 %v945_v23, 0.0 }
 0x493   :  { %v1021_v28 = vpack.c.bf16 %v1007_v25, %v1006_v24 }
 0x494   :  { %v1020_v29 = vpack.c.bf16 %v1005_v27, %v1004_v26  ;;  %v2603_v30 = vpop.f32.mrb[36].mxu0 }
 0x495   :  { %v966_v31 = vadd.f32 %v2603_v30, %v2160_v17  ;;  %v957_v12 = vpop.f32.mrb[37].mxu0 }
 0x496   :  { %v958_v33 = vadd.f32 %v2160_v17, %v957_v12  ;;  %v2604_v34 = vpop.f32.mrb[38].mxu0  ;;  %2629 = vmatprep.mubr.bf16.mxu1 %v1020_v29 }
 0x497   :  { %v969_v32 = vadd.f32 %v2604_v34, %v2160_v17  ;;  %v960_v3 = vpop.f32.mrb[39].mxu0  ;;  %2630 = vmatmul.mubr.bf16.vlgmr.msra.gmra.mrb[32].mxu1 %v1021_v28  ;;  %v1010_v38 = vmax.f32 %v966_v31, 0.0  ;;  %v3323_v28 = vld [vmem:[%s3629_s5 + $0x7] ss:$0 sm:$0xff] }
 0x498   :  { %v961_v36 = vadd.f32 %v2160_v17, %v960_v3  ;;  %v1008_v39 = vmax.f32 %v958_v33, 0.0  ;;  %2678 = vmatpush3.bf16.msra.mxu1 %v2853_v11 }
 0x499   :  { %v1011_v1 = vmax.f32 %v969_v32, 0.0  ;;  %2679 = vmatprep.subr.bf16.mxu1 %v2854_v13 }
 0x49a   :  { %v1009_v40 = vmax.f32 %v961_v36, 0.0 }
 0x49b   :  { %v1023_v7 = vpack.c.bf16 %v1011_v1, %v1010_v38 }
 0x49c   :  { %v1022_v42 = vpack.c.bf16 %v1009_v40, %v1008_v39  ;;  %v2607_v43 = vpop.f32.mrb[40].mxu0  ;;  %2680 = vmatpush3.bf16.msra.mxu1 %v2854_v13 }
 0x49d   :  { %v982_v44 = vadd.f32 %v2607_v43, %v2160_v17  ;;  %v973_v45 = vpop.f32.mrb[41].mxu0  ;;  %2681 = vmatprep.subr.bf16.mxu1 %v2855_v41 }
 0x49e   :  { %v974_v46 = vadd.f32 %v2160_v17, %v973_v45  ;;  %v2608_v47 = vpop.f32.mrb[42].mxu0  ;;  %2633 = vmatprep.mubr.bf16.mxu1 %v1022_v42 }
 0x49f   :  { %v985_v48 = vadd.f32 %v2608_v47, %v2160_v17  ;;  %v976_v49 = vpop.f32.mrb[43].mxu0  ;;  %2634 = vmatmul.mubr.bf16.gmra.mrb[36].mxu1 %v1023_v7  ;;  %v1014_v52 = vmax.f32 %v982_v44, 0.0 }
 0x4a0   :  { %v977_v50 = vadd.f32 %v2160_v17, %v976_v49  ;;  %v1012_v53 = vmax.f32 %v974_v46, 0.0  ;;  %2682 = vmatpush3.bf16.msra.mxu1 %v2855_v41 }
 0x4a1   :  { %v1015_v10 = vmax.f32 %v985_v48, 0.0  ;;  %2683 = vmatprep.subr.bf16.mxu1 %v2856_v15 }
 0x4a2   :  { %v1013_v54 = vmax.f32 %v977_v50, 0.0 }
 0x4a3   :  { %v1025_v35 = vpack.c.bf16 %v1015_v10, %v1014_v52 }
 0x4a4   :  { %v1024_v56 = vpack.c.bf16 %v1013_v54, %v1012_v53  ;;  %v2611_v57 = vpop.f32.mrb[44].mxu0  ;;  %2684 = vmatpush3.bf16.msra.mxu1 %v2856_v15 }
 0x4a5   :  { %v998_v58 = vadd.f32 %v2611_v57, %v2160_v17  ;;  %v989_v60 = vpop.f32.mrb[45].mxu0  ;;  %2685 = vmatprep.subr.bf16.mxu1 %v2857_v16 }
 0x4a6   :  { %v990_v61 = vadd.f32 %v2160_v17, %v989_v60  ;;  %v2612_v62 = vpop.f32.mrb[46].mxu0  ;;  %2637 = vmatprep.mubr.bf16.mxu1 %v1024_v56 }
 0x4a7   :  { %v1001_v63 = vadd.f32 %v2612_v62, %v2160_v17  ;;  %v992_v0 = vpop.f32.mrb[47].mxu0  ;;  %2638 = vmatmul.mubr.bf16.gmra.mrb[40].mxu1 %v1025_v35  ;;  %v1018_v4 = vmax.f32 %v998_v58, 0.0 }
 0x4a8   :  { %v993_v2 = vadd.f32 %v2160_v17, %v992_v0  ;;  %v1016_v6 = vmax.f32 %v990_v61, 0.0  ;;  %2686 = vmatpush3.bf16.msra.mxu1 %v2857_v16 }
 0x4a9   :  { %v1019_v55 = vmax.f32 %v1001_v63, 0.0  ;;  %2687 = vmatprep.subr.bf16.mxu1 %v2858_v8 }
 0x4aa   :  { %v1017_v9 = vmax.f32 %v993_v2, 0.0 }
 0x4ab   :  { %v1027_v59 = vpack.c.bf16 %v1019_v55, %v1018_v4 }
 0x4ac   :  { %v1026_v37 = vpack.c.bf16 %v1017_v9, %v1016_v6  ;;  %2688 = vmatpush3.bf16.msra.mxu1 %v2858_v8 }
 0x4ae   :  { %2641 = vmatprep.mubr.bf16.mxu1 %v1026_v37 }
 0x4af   :  { %2642 = vmatmul.mubr.bf16.gmra.mrb[44].mxu1 %v1027_v59 }
 0x56a   :  { %v2631_v17 = vpop.f32.mrb[32].mxu1 }
 0x56b   :  { %v1123_v18 = vadd.f32 %v2631_v17, %v3308_v14  ;;  %v1114_v19 = vpop.f32.mrb[33].mxu1 }
 0x56c   :  { %v1115_v21 = vadd.f32 %v3308_v14, %v1114_v19  ;;  %v2632_v51 = vpop.f32.mrb[34].mxu1 }
 0x56d   :  { %v1179_v22 = vmax.f32 %v1123_v18, 0.0  ;;  %v1126_v5 = vadd.f32 %v2632_v51, %v3308_v14  ;;  %v1117_v23 = vpop.f32.mrb[35].mxu1 }
 0x56e   :  { %v1177_v24 = vmax.f32 %v1115_v21, 0.0  ;;  %v1118_v25 = vadd.f32 %v3308_v14, %v1117_v23 }
 0x56f   :  { %v1199_v26 = vmul.f32 %v3314_v20, %v1179_v22  ;;  %v1180_v27 = vmax.f32 %v1126_v5, 0.0 }
 0x570   :  { %v1197_v29 = vmul.f32 %v3314_v20, %v1177_v24  ;;  %v1178_v30 = vmax.f32 %v1118_v25, 0.0 }
 0x571   :  { %v1200_v31 = vmul.f32 %v3314_v20, %v1180_v27  ;;  %v1219_v34 = vadd.f32 %v3323_v28, %v1199_v26 }
 0x572   :  { %v1198_v12 = vmul.f32 %v3314_v20, %v1178_v30  ;;  %v2635_v33 = vpop.f32.mrb[36].mxu1  ;;  %v1217_v38 = vadd.f32 %v3323_v28, %v1197_v29 }
 0x573   :  { %v1220_v32 = vadd.f32 %v3323_v28, %v1200_v31  ;;  %v1139_v3 = vadd.f32 %v2635_v33, %v3308_v14  ;;  %v1130_v36 = vpop.f32.mrb[37].mxu1 }
 0x574   :  { %v1218_v1 = vadd.f32 %v3323_v28, %v1198_v12  ;;  %v1131_v39 = vadd.f32 %v3308_v14, %v1130_v36  ;;  %v2636_v40 = vpop.f32.mrb[38].mxu1 }
 0x575   :  { %v3334_v7 = vpack.c.bf16 %v1220_v32, %v1219_v34  ;;  %v1183_v42 = vmax.f32 %v1139_v3, 0.0  ;;  %v1142_v43 = vadd.f32 %v2636_v40, %v3308_v14  ;;  %v1133_v44 = vpop.f32.mrb[39].mxu1 }
 0x576   :  { %v3337_v45 = vpack.c.bf16 %v1218_v1, %v1217_v38  ;;  %v1181_v46 = vmax.f32 %v1131_v39, 0.0  ;;  %v1134_v47 = vadd.f32 %v3308_v14, %v1133_v44  ;;  %v2901_v44 = vld [vmem:[%s3627_s0 + $0x20] sm:$0xff]  }
 0x577   :  { %v1203_v48 = vmul.f32 %v3314_v20, %v1183_v42  ;;  %v1184_v49 = vmax.f32 %v1142_v43, 0.0  ;;  %v2900_v43 = vld [vmem:[%s3627_s0 + $0x18] sm:$0xff]  }
 0x578   :  { %v1201_v50 = vmul.f32 %v3314_v20, %v1181_v46  ;;  %v1182_v52 = vmax.f32 %v1134_v47, 0.0  ;;  %2645 = vmatprep.subr.bf16.mxu0 %v3337_v45  ;;  %v2902_v46 = vld [vmem:[%s3627_s0 + $0x28] sm:$0xff]   ;;  %v2903_v47 = vld [vmem:[%s3627_s0 + $0x30] sm:$0xff]  }
 0x579   :  { %v1204_v10 = vmul.f32 %v3314_v20, %v1184_v49  ;;  %2646 = vmatpush3.bf16.msra.mxu0 %v3337_v45  ;;  %v1223_v35 = vadd.f32 %v3323_v28, %v1203_v48  ;;  %v2904_v48 = vld [vmem:[%s3627_s0 + $0x38] sm:$0xff]   ;;  %v2859_v49 = vld [vmem:[%s3628_s4 + $0x130] sm:$0xff]  }
 0x57a   :  { %v1202_v53 = vmul.f32 %v3314_v20, %v1182_v52  ;;  %v2639_v54 = vpop.f32.mrb[40].mxu1  ;;  %2647 = vmatprep.subr.bf16.mxu0 %v3334_v7  ;;  %v1221_v60 = vadd.f32 %v3323_v28, %v1201_v50  ;;  %2689 = vmatprep.subr.bf16.mxu1 %v2859_v49  ;;  %v2860_v50 = vld [vmem:[%s3628_s4 + $0x138] sm:$0xff]   ;;  %v2861_v52 = vld [vmem:[%s3628_s4 + $0x140] sm:$0xff]  }
 0x57b   :  { %v1224_v56 = vadd.f32 %v3323_v28, %v1204_v10  ;;  %v1155_v57 = vadd.f32 %v2639_v54, %v3308_v14  ;;  %v1146_v58 = vpop.f32.mrb[41].mxu1  ;;  %2690 = vmatpush3.bf16.msra.mxu1 %v2859_v49  ;;  %v2862_v10 = vld [vmem:[%s3628_s4 + $0x148] sm:$0xff]   ;;  %v2864_v54 = vld [vmem:[%s3628_s4 + $0x158] sm:$0xff]  }
 0x57c   :  { %v1222_v61 = vadd.f32 %v3323_v28, %v1202_v53  ;;  %v1147_v62 = vadd.f32 %v3308_v14, %v1146_v58  ;;  %v2640_v63 = vpop.f32.mrb[42].mxu1  ;;  %2691 = vmatprep.subr.bf16.mxu1 %v2860_v50  ;;  %v2863_v53 = vld [vmem:[%s3628_s4 + $0x150] sm:$0xff]  }
 0x57d   :  { %v3353_v0 = vpack.c.bf16 %v1224_v56, %v1223_v35  ;;  %v1187_v2 = vmax.f32 %v1155_v57, 0.0  ;;  %v1158_v4 = vadd.f32 %v2640_v63, %v3308_v14  ;;  %v1149_v55 = vpop.f32.mrb[43].mxu1  ;;  %2648 = vmatpush3.bf16.msra.mxu0 %v3334_v7  ;;  %v2865_v35 = vld [vmem:[%s3628_s4 + $0x160] sm:$0xff]   ;;  %v2866_v56 = vld [vmem:[%s3628_s4 + $0x168] sm:$0xff]   ;;  %v1281_v57 = vunpack.c.l.bf16 %v3334_v7 }
 0x57e   :  { %v3357_v6 = vpack.c.bf16 %v1222_v61, %v1221_v60  ;;  %v1185_v9 = vmax.f32 %v1147_v62, 0.0  ;;  %v1150_v59 = vadd.f32 %v3308_v14, %v1149_v55  ;;  %v1279_v60 = vunpack.c.l.bf16 %v3337_v45 }
 0x57f   :  { %v1207_v37 = vmul.f32 %v3314_v20, %v1187_v2  ;;  %v1188_v11 = vmax.f32 %v1158_v4, 0.0  ;;  %2692 = vmatpush3.bf16.msra.mxu1 %v2860_v50  ;;  %v1282_v63 = vunpack.c.h.bf16 %v3334_v7  ;;  %v1280_v55 = vunpack.c.h.bf16 %v3337_v45 }
 0x580   :  { %v1205_v13 = vmul.f32 %v3314_v20, %v1185_v9  ;;  %v1186_v41 = vmax.f32 %v1150_v59, 0.0  ;;  %2649 = vmatprep.subr.bf16.mxu0 %v3357_v6  ;;  %v1286_v7 = vunpack.c.h.bf16 %v3353_v0  ;;  %v1284_v45 = vunpack.c.h.bf16 %v3357_v6 }
 0x581   :  { %v1208_v15 = vmul.f32 %v3314_v20, %v1188_v11  ;;  %2650 = vmatpush3.bf16.msra.mxu0 %v3357_v6  ;;  %v1227_v17 = vadd.f32 %v3323_v28, %v1207_v37 }
 0x582   :  { %v1206_v16 = vmul.f32 %v3314_v20, %v1186_v41  ;;  %v2643_v8 = vpop.f32.mrb[44].mxu1  ;;  %2651 = vmatprep.subr.bf16.mxu0 %v3353_v0  ;;  %v1225_v51 = vadd.f32 %v3323_v28, %v1205_v13  ;;  %v1285_v41 = vunpack.c.l.bf16 %v3353_v0 }
 0x583   :  { %v1228_v18 = vadd.f32 %v3323_v28, %v1208_v15  ;;  %v1171_v19 = vadd.f32 %v2643_v8, %v3308_v14  ;;  %v1162_v21 = vpop.f32.mrb[45].mxu1 }
 0x584   :  { %v1226_v22 = vadd.f32 %v3323_v28, %v1206_v16  ;;  %v1163_v5 = vadd.f32 %v3308_v14, %v1162_v21  ;;  %v2644_v23 = vpop.f32.mrb[46].mxu1  ;;  %v1283_v16 = vunpack.c.l.bf16 %v3357_v6 }
 0x585   :  { %v3373_v24 = vpack.c.bf16 %v1228_v18, %v1227_v17  ;;  %v1191_v25 = vmax.f32 %v1171_v19, 0.0  ;;  %v1174_v26 = vadd.f32 %v2644_v23, %v3308_v14  ;;  %v1165_v27 = vpop.f32.mrb[47].mxu1  ;;  %2652 = vmatpush3.bf16.msra.mxu0 %v3353_v0 }
 0x586   :  { %v3377_v29 = vpack.c.bf16 %v1226_v22, %v1225_v51  ;;  %v1189_v30 = vmax.f32 %v1163_v5, 0.0  ;;  %v1166_v31 = vadd.f32 %v3308_v14, %v1165_v27 }
 0x587   :  { %v1211_v12 = vmul.f32 %v3314_v20, %v1191_v25  ;;  %v1192_v33 = vmax.f32 %v1174_v26, 0.0  ;;  %v1289_v25 = vunpack.c.l.bf16 %v3373_v24  ;;  %v1290_v0 = vunpack.c.h.bf16 %v3373_v24 }
 0x588   :  { %v1209_v34 = vmul.f32 %v3314_v20, %v1189_v30  ;;  %v1190_v32 = vmax.f32 %v1166_v31, 0.0  ;;  %2653 = vmatprep.subr.bf16.mxu0 %v3377_v29  ;;  %v1287_v27 = vunpack.c.l.bf16 %v3377_v29  ;;  %v1288_v6 = vunpack.c.h.bf16 %v3377_v29 }
 0x589   :  { %v1212_v3 = vmul.f32 %v3314_v20, %v1192_v33  ;;  %2654 = vmatpush3.bf16.msra.mxu0 %v3377_v29  ;;  %v1231_v38 = vadd.f32 %v3323_v28, %v1211_v12 }
 0x58a   :  { %v1210_v36 = vmul.f32 %v3314_v20, %v1190_v32  ;;  %2655 = vmatprep.subr.bf16.mxu0 %v3373_v24  ;;  %v1229_v1 = vadd.f32 %v3323_v28, %v1209_v34  ;;  %v2898_v20 = vld [vmem:[%s3627_s0 + $0x8] sm:$0xff]  }
 0x58b   :  { %v1232_v14 = vadd.f32 %v3323_v28, %v1212_v3 }
 0x58c   :  { %v1230_v39 = vadd.f32 %v3323_v28, %v1210_v36  ;;  %v2899_v28 = vld [vmem:[%s3627_s0 + $0x10] sm:$0xff]  }
 0x58d   :  { %v3391_v40 = vpack.c.bf16 %v1232_v14, %v1231_v38  ;;  %2656 = vmatpush3.bf16.msra.mxu0 %v3373_v24 }
 0x58e   :  { %v3394_v42 = vpack.c.bf16 %v1230_v39, %v1229_v1 }
 0x58f   :  { %v1293_v14 = vunpack.c.l.bf16 %v3391_v40  ;;  %v1294_v24 = vunpack.c.h.bf16 %v3391_v40 }
 0x590   :  { %2657 = vmatprep.subr.bf16.mxu0 %v3394_v42  ;;  %v1291_v39 = vunpack.c.l.bf16 %v3394_v42  ;;  %v1292_v29 = vunpack.c.h.bf16 %v3394_v42 }
 0x591   :  { %2658 = vmatpush3.bf16.msra.mxu0 %v3394_v42  ;;  %v2212_v42 = vld [vmem:[%s3629_s5 + $0x8] ss:$0 sm:$0xff] }
 0x592   :  { %2659 = vmatprep.subr.bf16.mxu0 %v3391_v40 }
 0x595   :  { %2660 = vmatpush3.bf16.msra.mxu0 %v3391_v40  ;;  %v2868_v40 = vld [vmem:[%s3628_s4 + $0x178] sm:$0xff]  }
 0x596   :  { %2709 = vmatprep.subr.bf16.mxu0 %v2861_v52 }
 0x598   :  { %2662 = vmatmul.mubr.bf16.vlgmr.msra.gmra.mrb[48].mxu0 %v2898_v20 }
 0x599   :  { %2665 = vmatprep.mubr.bf16.mxu0 %v2899_v28  ;;  %2710 = vmatpush3.bf16.msra.mxu0 %v2861_v52  ;;  %v2867_v52 = vld [vmem:[%s3628_s4 + $0x170] sm:$0xff]  }
 0x59a   :  { %2711 = vmatprep.subr.bf16.mxu0 %v2862_v10 }
 0x59d   :  { %2712 = vmatpush3.bf16.msra.mxu0 %v2862_v10 }
 0x59e   :  { %2713 = vmatprep.subr.bf16.mxu0 %v2863_v53 }
 0x5a0   :  { %2666 = vmatmul.mubr.bf16.gmra.mrb[52].mxu0 %v2900_v43 }
 0x5a1   :  { %2669 = vmatprep.mubr.bf16.mxu0 %v2901_v44  ;;  %2714 = vmatpush3.bf16.msra.mxu0 %v2863_v53 }
 0x5a2   :  { %2715 = vmatprep.subr.bf16.mxu0 %v2864_v54 }
 0x5a5   :  { %2716 = vmatpush3.bf16.msra.mxu0 %v2864_v54 }
 0x5a6   :  { %2717 = vmatprep.subr.bf16.mxu0 %v2865_v35 }
 0x5a8   :  { %2670 = vmatmul.mubr.bf16.gmra.mrb[56].mxu0 %v2902_v46 }
 0x5a9   :  { %2673 = vmatprep.mubr.bf16.mxu0 %v2903_v47  ;;  %2718 = vmatpush3.bf16.msra.mxu0 %v2865_v35 }
 0x5aa   :  { %2719 = vmatprep.subr.bf16.mxu0 %v2866_v56 }
 0x5ad   :  { %2720 = vmatpush3.bf16.msra.mxu0 %v2866_v56 }
 0x5ae   :  { %2721 = vmatprep.subr.bf16.mxu0 %v2867_v52 }
 0x5b0   :  { %2674 = vmatmul.mubr.bf16.gmra.mrb[60].mxu0 %v2904_v48 }
 0x5b1   :  { %2722 = vmatpush3.bf16.msra.mxu0 %v2867_v52  ;;  %v2871_v52 = vld [vmem:[%s3628_s4 + $0x190] sm:$0xff]  }
 0x5b2   :  { %2723 = vmatprep.subr.bf16.mxu0 %v2868_v40 }
 0x5b5   :  { %2724 = vmatpush3.bf16.msra.mxu0 %v2868_v40  ;;  %v2872_v40 = vld [vmem:[%s3628_s4 + $0x198] sm:$0xff]  }
 0x66b   :  { %v2663_v58 = vpop.f32.mrb[48].mxu0 }
 0x66c   :  { %v1338_v61 = vadd.f32 %v2663_v58, %v1281_v57  ;;  %v1329_v62 = vpop.f32.mrb[49].mxu0 }
 0x66d   :  { %v1330_v2 = vadd.f32 %v1329_v62, %v1279_v60  ;;  %v2664_v4 = vpop.f32.mrb[50].mxu0 }
 0x66e   :  { %v1341_v9 = vadd.f32 %v2664_v4, %v1282_v63  ;;  %v1332_v59 = vpop.f32.mrb[51].mxu0 }
 0x66f   :  { %v1333_v37 = vadd.f32 %v1332_v59, %v1280_v55 }
 0x670   :  { %v1393_v11 = vpack.c.bf16 %v1341_v9, %v1338_v61 }
 0x671   :  { %v1392_v13 = vpack.c.bf16 %v1333_v37, %v1330_v2 }
 0x673   :  { %v2667_v15 = vpop.f32.mrb[52].mxu0  ;;  %2693 = vmatprep.mubr.bf16.mxu1 %v1392_v13 }
 0x674   :  { %v1354_v8 = vadd.f32 %v2667_v15, %v1285_v41  ;;  %v1345_v17 = vpop.f32.mrb[53].mxu0  ;;  %2694 = vmatmul.mubr.bf16.vlgmr.msra.gmra.mrb[48].mxu1 %v1393_v11 }
 0x675   :  { %v1346_v18 = vadd.f32 %v1345_v17, %v1283_v16  ;;  %v2668_v19 = vpop.f32.mrb[54].mxu0 }
 0x676   :  { %v1357_v21 = vadd.f32 %v2668_v19, %v1286_v7  ;;  %v1348_v51 = vpop.f32.mrb[55].mxu0 }
 0x677   :  { %v1349_v22 = vadd.f32 %v1348_v51, %v1284_v45 }
 0x678   :  { %v1395_v5 = vpack.c.bf16 %v1357_v21, %v1354_v8 }
 0x679   :  { %v1394_v23 = vpack.c.bf16 %v1349_v22, %v1346_v18 }
 0x67b   :  { %v2671_v26 = vpop.f32.mrb[56].mxu0  ;;  %2697 = vmatprep.mubr.bf16.mxu1 %v1394_v23 }
 0x67c   :  { %v1370_v30 = vadd.f32 %v2671_v26, %v1289_v25  ;;  %v1361_v31 = vpop.f32.mrb[57].mxu0  ;;  %2698 = vmatmul.mubr.bf16.gmra.mrb[52].mxu1 %v1395_v5 }
 0x67d   :  { %v1362_v12 = vadd.f32 %v1361_v31, %v1287_v27  ;;  %v2672_v33 = vpop.f32.mrb[58].mxu0 }
 0x67e   :  { %v1373_v34 = vadd.f32 %v2672_v33, %v1290_v0  ;;  %v1364_v32 = vpop.f32.mrb[59].mxu0 }
 0x67f   :  { %v1365_v3 = vadd.f32 %v1364_v32, %v1288_v6 }
 0x680   :  { %v1397_v36 = vpack.c.bf16 %v1373_v34, %v1370_v30 }
 0x681   :  { %v1396_v38 = vpack.c.bf16 %v1365_v3, %v1362_v12 }
 0x683   :  { %v2675_v1 = vpop.f32.mrb[60].mxu0  ;;  %2701 = vmatprep.mubr.bf16.mxu1 %v1396_v38 }
 0x684   :  { %v1386_v20 = vadd.f32 %v2675_v1, %v1293_v14  ;;  %v1377_v28 = vpop.f32.mrb[61].mxu0  ;;  %2702 = vmatmul.mubr.bf16.gmra.mrb[56].mxu1 %v1397_v36 }
 0x685   :  { %v1378_v43 = vadd.f32 %v1377_v28, %v1291_v39  ;;  %v2676_v44 = vpop.f32.mrb[62].mxu0 }
 0x686   :  { %v1389_v46 = vadd.f32 %v2676_v44, %v1294_v24  ;;  %v1380_v47 = vpop.f32.mrb[63].mxu0 }
 0x687   :  { %v1381_v48 = vadd.f32 %v1380_v47, %v1292_v29  ;;  %v2869_v47 = vld [vmem:[%s3628_s4 + $0x180] sm:$0xff]  }
 0x688   :  { %v1399_v49 = vpack.c.bf16 %v1389_v46, %v1386_v20  ;;  %v2905_v46 = vmov 0.0  }
 0x689   :  { %v1398_v50 = vpack.c.bf16 %v1381_v48, %v1378_v43  ;;  %2741 = vmatprep.subr.bf16.mxu1 %v2905_v46  ;;  %2761 = vmatprep.subr.bf16.mxu0 %v2905_v46  ;;  %v2907_v48 = vmov 0  }
 0x68a   :  { %2804 = vset.pattern.permute.xlu0 %v2907_v48 }
 0x68b   :  { %2705 = vmatprep.mubr.bf16.mxu1 %v1398_v50  ;;  %v2870_v50 = vld [vmem:[%s3628_s4 + $0x188] sm:$0xff]  }
 0x68c   :  { %2706 = vmatmul.mubr.bf16.gmra.mrb[60].mxu1 %v1399_v49  ;;  %v1827_v49 = vld [vmem:[%s3630_s3] sm:$0xff] }
 0x68d   :  { %2757 = vmatprep.mubr.msk.bf16.mxu1 %vm2906_vm0, %v2905_v46  ;;  %1830 = vperm.xlu0 %2804, %v1827_v49  }
 0x747   :  { %v2695_v10 = vpop.f32.mrb[48].mxu1 }
 0x748   :  { %v1495_v53 = vadd.f32 %v2695_v10, %v2212_v42  ;;  %v1486_v54 = vpop.f32.mrb[49].mxu1  ;;  %v2874_v10 = vld [vmem:[%s3628_s4 + $0x1a8] sm:$0xff]  }
 0x749   :  { %v1487_v35 = vadd.f32 %v2212_v42, %v1486_v54  ;;  %v2696_v56 = vpop.f32.mrb[50].mxu1  ;;  %v3510_v54 = vld [vmem:[%s3629_s5 + $0x9] ss:$0 sm:$0xff] }
 0x74a   :  { %v1498_v57 = vadd.f32 %v2696_v56, %v2212_v42  ;;  %v1489_v58 = vpop.f32.mrb[51].mxu1  ;;  %v1551_v61 = vmax.f32 %v1495_v53, 0.0  ;;  %v2875_v53 = vld [vmem:[%s3628_s4 + $0x1b0] sm:$0xff]  }
 0x74b   :  { %v1490_v60 = vadd.f32 %v2212_v42, %v1489_v58  ;;  %v1549_v63 = vmax.f32 %v1487_v35, 0.0  ;;  %v3516_v58 = vld [vmem:[%s3629_s5 + $0xa] ss:$0 sm:$0xff] }
 0x74c   :  { %v1552_v62 = vmax.f32 %v1498_v57, 0.0 }
 0x74d   :  { %v1550_v2 = vmax.f32 %v1490_v60, 0.0 }
 0x74e   :  { %v1566_v4 = vpack.c.bf16 %v1552_v62, %v1551_v61 }
 0x74f   :  { %v1565_v55 = vpack.c.bf16 %v1550_v2, %v1549_v63  ;;  %v2699_v9 = vpop.f32.mrb[52].mxu1 }
 0x750   :  { %v1511_v59 = vadd.f32 %v2699_v9, %v2212_v42  ;;  %v1502_v37 = vpop.f32.mrb[53].mxu1 }
 0x751   :  { %v1503_v11 = vadd.f32 %v2212_v42, %v1502_v37  ;;  %v2700_v13 = vpop.f32.mrb[54].mxu1  ;;  %2725 = vmatprep.mubr.bf16.mxu0 %v1565_v55  ;;  %v3525_v37 = vld [vmem:[%s3629_s5 + $0xb] ss:$0 sm:$0xff] }
 0x752   :  { %v1514_v41 = vadd.f32 %v2700_v13, %v2212_v42  ;;  %v1505_v15 = vpop.f32.mrb[55].mxu1  ;;  %2726 = vmatmul.mubr.bf16.vlgmr.msra.gmra.mrb[64].mxu0 %v1566_v4  ;;  %v1555_v8 = vmax.f32 %v1511_v59, 0.0 }
 0x753   :  { %v1506_v16 = vadd.f32 %v2212_v42, %v1505_v15  ;;  %v1553_v7 = vmax.f32 %v1503_v11, 0.0  ;;  %2762 = vmatpush3.bf16.msra.mxu0 %v2869_v47 }
 0x754   :  { %v1556_v17 = vmax.f32 %v1514_v41, 0.0  ;;  %2763 = vmatprep.subr.bf16.mxu0 %v2905_v46 }
 0x755   :  { %v1554_v18 = vmax.f32 %v1506_v16, 0.0 }
 0x756   :  { %v1568_v19 = vpack.c.bf16 %v1556_v17, %v1555_v8 }
 0x757   :  { %v1567_v45 = vpack.c.bf16 %v1554_v18, %v1553_v7  ;;  %v2703_v21 = vpop.f32.mrb[56].mxu1  ;;  %2764 = vmatpush3.bf16.msra.mxu0 %v2870_v50 }
 0x758   :  { %v1527_v51 = vadd.f32 %v2703_v21, %v2212_v42  ;;  %v1518_v22 = vpop.f32.mrb[57].mxu1  ;;  %2765 = vmatprep.subr.bf16.mxu0 %v2905_v46 }
 0x759   :  { %v1519_v5 = vadd.f32 %v2212_v42, %v1518_v22  ;;  %v2704_v23 = vpop.f32.mrb[58].mxu1  ;;  %2729 = vmatprep.mubr.bf16.mxu0 %v1567_v45 }
 0x75a   :  { %v1530_v25 = vadd.f32 %v2704_v23, %v2212_v42  ;;  %v1521_v26 = vpop.f32.mrb[59].mxu1  ;;  %2730 = vmatmul.mubr.bf16.gmra.mrb[68].mxu0 %v1568_v19  ;;  %v1559_v30 = vmax.f32 %v1527_v51, 0.0 }
 0x75b   :  { %v1522_v27 = vadd.f32 %v2212_v42, %v1521_v26  ;;  %v1557_v0 = vmax.f32 %v1519_v5, 0.0  ;;  %2766 = vmatpush3.bf16.msra.mxu0 %v2871_v52 }
 0x75c   :  { %v1560_v31 = vmax.f32 %v1530_v25, 0.0  ;;  %2767 = vmatprep.subr.bf16.mxu0 %v2905_v46 }
 0x75d   :  { %v1558_v12 = vmax.f32 %v1522_v27, 0.0 }
 0x75e   :  { %v1570_v33 = vpack.c.bf16 %v1560_v31, %v1559_v30 }
 0x75f   :  { %v1569_v6 = vpack.c.bf16 %v1558_v12, %v1557_v0  ;;  %v2707_v34 = vpop.f32.mrb[60].mxu1  ;;  %2768 = vmatpush3.bf16.msra.mxu0 %v2872_v40 }
 0x760   :  { %v1543_v32 = vadd.f32 %v2707_v34, %v2212_v42  ;;  %v1534_v3 = vpop.f32.mrb[61].mxu1  ;;  %2769 = vmatprep.subr.bf16.mxu0 %v2905_v46 }
 0x761   :  { %v1535_v36 = vadd.f32 %v2212_v42, %v1534_v3  ;;  %v2708_v38 = vpop.f32.mrb[62].mxu1  ;;  %2733 = vmatprep.mubr.bf16.mxu0 %v1569_v6 }
 0x762   :  { %v1546_v14 = vadd.f32 %v2708_v38, %v2212_v42  ;;  %v1537_v1 = vpop.f32.mrb[63].mxu1  ;;  %2734 = vmatmul.mubr.bf16.gmra.mrb[72].mxu0 %v1570_v33  ;;  %v1563_v20 = vmax.f32 %v1543_v32, 0.0 }
 0x763   :  { %v1538_v39 = vadd.f32 %v2212_v42, %v1537_v1  ;;  %v1561_v24 = vmax.f32 %v1535_v36, 0.0  ;;  %v2873_v42 = vld [vmem:[%s3628_s4 + $0x1a0] sm:$0xff]  }
 0x764   :  { %v1564_v28 = vmax.f32 %v1546_v14, 0.0  ;;  %2770 = vmatpush3.bf16.msra.mxu0 %v2873_v42 }
 0x765   :  { %v1562_v43 = vmax.f32 %v1538_v39, 0.0  ;;  %2771 = vmatprep.subr.bf16.mxu0 %v2905_v46 }
 0x766   :  { %v1572_v44 = vpack.c.bf16 %v1564_v28, %v1563_v20 }
 0x767   :  { %v1571_v29 = vpack.c.bf16 %v1562_v43, %v1561_v24 }
 0x768   :  { %2772 = vmatpush3.bf16.msra.mxu0 %v2874_v10 }
 0x769   :  { %2737 = vmatprep.mubr.bf16.mxu0 %v1571_v29  ;;  %2773 = vmatprep.subr.bf16.mxu0 %v2905_v46 }
 0x76a   :  { %2738 = vmatmul.mubr.bf16.gmra.mrb[76].mxu0 %v1572_v44 }
 0x76b   :  { %2777 = vmatprep.mubr.msk.bf16.mxu0 %vm2906_vm0, %v2905_v46 }
 0x76c   :  { %2774 = vmatpush3.bf16.msra.mxu0 %v2875_v53 }
 0x76d   :  { %2775 = vmatprep.subr.bf16.mxu0 %v2905_v46 }
 0x825   :  { %v2727_v35 = vpop.f32.mrb[64].mxu0 }
 0x826   :  { %v1668_v56 = vadd.f32 %v2727_v35, %v3510_v54  ;;  %v1659_v57 = vpop.f32.mrb[65].mxu0 }
 0x827   :  { %v1660_v60 = vadd.f32 %v3510_v54, %v1659_v57  ;;  %v2728_v61 = vpop.f32.mrb[66].mxu0 }
 0x828   :  { %v1724_v62 = vmax.f32 %v1668_v56, 0.0  ;;  %v1671_v63 = vadd.f32 %v2728_v61, %v3510_v54  ;;  %v1662_v2 = vpop.f32.mrb[67].mxu0 }
 0x829   :  { %v1722_v4 = vmax.f32 %v1660_v60, 0.0  ;;  %v1663_v55 = vadd.f32 %v3510_v54, %v1662_v2 }
 0x82a   :  { %v1744_v9 = vmul.f32 %v3516_v58, %v1724_v62  ;;  %v1725_v59 = vmax.f32 %v1671_v63, 0.0 }
 0x82b   :  { %v1742_v11 = vmul.f32 %v3516_v58, %v1722_v4  ;;  %v1723_v13 = vmax.f32 %v1663_v55, 0.0 }
 0x82c   :  { %v1745_v41 = vmul.f32 %v3516_v58, %v1725_v59  ;;  %v1764_v8 = vadd.f32 %v3525_v37, %v1744_v9 }
 0x82d   :  { %v1743_v15 = vmul.f32 %v3516_v58, %v1723_v13  ;;  %v2731_v16 = vpop.f32.mrb[68].mxu0  ;;  %v1762_v19 = vadd.f32 %v3525_v37, %v1742_v11 }
 0x82e   :  { %v1765_v17 = vadd.f32 %v3525_v37, %v1745_v41  ;;  %v1684_v7 = vadd.f32 %v2731_v16, %v3510_v54  ;;  %v1675_v18 = vpop.f32.mrb[69].mxu0 }
 0x82f   :  { %v1763_v45 = vadd.f32 %v3525_v37, %v1743_v15  ;;  %v1676_v21 = vadd.f32 %v3510_v54, %v1675_v18  ;;  %v2732_v51 = vpop.f32.mrb[70].mxu0 }
 0x830   :  { %v1779_v22 = vpack.c.bf16 %v1765_v17, %v1764_v8  ;;  %v1728_v5 = vmax.f32 %v1684_v7, 0.0  ;;  %v1687_v23 = vadd.f32 %v2732_v51, %v3510_v54  ;;  %v1678_v25 = vpop.f32.mrb[71].mxu0 }
 0x831   :  { %v1778_v26 = vpack.c.bf16 %v1763_v45, %v1762_v19  ;;  %v1726_v27 = vmax.f32 %v1676_v21, 0.0  ;;  %v1679_v30 = vadd.f32 %v3510_v54, %v1678_v25  ;;  %v2878_v25 = vld [vmem:[%s3628_s4 + $0x1c8] sm:$0xff]  }
 0x832   :  { %v1748_v31 = vmul.f32 %v3516_v58, %v1728_v5  ;;  %v1729_v0 = vmax.f32 %v1687_v23, 0.0  ;;  %v2877_v23 = vld [vmem:[%s3628_s4 + $0x1c0] sm:$0xff]  }
 0x833   :  { %v1746_v12 = vmul.f32 %v3516_v58, %v1726_v27  ;;  %v1727_v33 = vmax.f32 %v1679_v30, 0.0  ;;  %2742 = vmatpush3.bf16.msra.mxu1 %v1778_v26  ;;  %v2879_v26 = vld [vmem:[%s3628_s4 + $0x1d0] sm:$0xff]   ;;  %v2880_v27 = vld [vmem:[%s3628_s4 + $0x1d8] sm:$0xff]   ;;  %v2881_v30 = vld [vmem:[%s3628_s4 + $0x1e0] sm:$0xff]  }
 0x834   :  { %v1749_v6 = vmul.f32 %v3516_v58, %v1729_v0  ;;  %2743 = vmatprep.subr.bf16.mxu1 %v2905_v46  ;;  %v1768_v3 = vadd.f32 %v3525_v37, %v1748_v31  ;;  %v2882_v31 = vld [vmem:[%s3628_s4 + $0x1e8] sm:$0xff]   ;;  %v1831_v0 = vpop.permute.xlu0 %1830 }
 0x835   :  { %v1747_v34 = vmul.f32 %v3516_v58, %v1727_v33  ;;  %v2735_v32 = vpop.f32.mrb[72].mxu0  ;;  %v1766_v1 = vadd.f32 %v3525_v37, %v1746_v12 }
 0x836   :  { %v1769_v36 = vadd.f32 %v3525_v37, %v1749_v6  ;;  %v1700_v38 = vadd.f32 %v2735_v32, %v3510_v54  ;;  %v1691_v14 = vpop.f32.mrb[73].mxu0 }
 0x837   :  { %v1767_v39 = vadd.f32 %v3525_v37, %v1747_v34  ;;  %v1692_v20 = vadd.f32 %v3510_v54, %v1691_v14  ;;  %v2736_v28 = vpop.f32.mrb[74].mxu0  ;;  %2744 = vmatpush3.bf16.msra.mxu1 %v1779_v22  ;;  %v2264_v14 = vld [vmem:[%s3629_s5 + $0xc] ss:$0 sm:$0xff] }
 0x838   :  { %v1781_v24 = vpack.c.bf16 %v1769_v36, %v1768_v3  ;;  %v1732_v43 = vmax.f32 %v1700_v38, 0.0  ;;  %v1703_v44 = vadd.f32 %v2736_v28, %v3510_v54  ;;  %v1694_v29 = vpop.f32.mrb[75].mxu0  ;;  %2745 = vmatprep.subr.bf16.mxu1 %v2905_v46  ;;  %v2883_v36 = vld [vmem:[%s3628_s4 + $0x1f0] sm:$0xff]   ;;  %v2884_v38 = vld [vmem:[%s3628_s4 + $0x1f8] sm:$0xff]  }
 0x839   :  { %v1780_v47 = vpack.c.bf16 %v1767_v39, %v1766_v1  ;;  %v1730_v48 = vmax.f32 %v1692_v20, 0.0  ;;  %v1695_v49 = vadd.f32 %v3510_v54, %v1694_v29  ;;  %v2057_v29 = vlaneseq }
 0x83a   :  { %v1752_v50 = vmul.f32 %v3516_v58, %v1732_v43  ;;  %v1733_v52 = vmax.f32 %v1703_v44, 0.0 }
 0x83b   :  { %v1750_v40 = vmul.f32 %v3516_v58, %v1730_v48  ;;  %v1731_v42 = vmax.f32 %v1695_v49, 0.0  ;;  %2746 = vmatpush3.bf16.msra.mxu1 %v1780_v47  ;;  %v2058_v47 = vand.u32 127, %v2057_v29 }
 0x83c   :  { %v1753_v10 = vmul.f32 %v3516_v58, %v1733_v52  ;;  %2747 = vmatprep.subr.bf16.mxu1 %v2905_v46  ;;  %v1772_v56 = vadd.f32 %v3525_v37, %v1752_v50 }
 0x83d   :  { %v1751_v53 = vmul.f32 %v3516_v58, %v1731_v42  ;;  %v2739_v35 = vpop.f32.mrb[76].mxu0  ;;  %v1770_v62 = vadd.f32 %v3525_v37, %v1750_v40  ;;  %vm2059_vm1 = vcmp.lt.s32.totalorder %v2058_v47, 4 }
 0x83e   :  { %v1773_v57 = vadd.f32 %v3525_v37, %v1753_v10  ;;  %v1716_v60 = vadd.f32 %v2739_v35, %v3510_v54  ;;  %v1707_v61 = vpop.f32.mrb[77].mxu0 }
 0x83f   :  { %v1771_v63 = vadd.f32 %v3525_v37, %v1751_v53  ;;  %v1708_v2 = vadd.f32 %v3510_v54, %v1707_v61  ;;  %v2740_v4 = vpop.f32.mrb[78].mxu0  ;;  %2748 = vmatpush3.bf16.msra.mxu1 %v1781_v24 }
 0x840   :  { %v1783_v55 = vpack.c.bf16 %v1773_v57, %v1772_v56  ;;  %v1736_v9 = vmax.f32 %v1716_v60, 0.0  ;;  %v1719_v59 = vadd.f32 %v2740_v4, %v3510_v54  ;;  %v1710_v11 = vpop.f32.mrb[79].mxu0  ;;  %2749 = vmatprep.subr.bf16.mxu1 %v2905_v46 }
 0x841   :  { %v1782_v13 = vpack.c.bf16 %v1771_v63, %v1770_v62  ;;  %v1734_v41 = vmax.f32 %v1708_v2, 0.0  ;;  %v1711_v15 = vadd.f32 %v3510_v54, %v1710_v11 }
 0x842   :  { %v1756_v16 = vmul.f32 %v3516_v58, %v1736_v9  ;;  %v1737_v8 = vmax.f32 %v1719_v59, 0.0 }
 0x843   :  { %v1754_v17 = vmul.f32 %v3516_v58, %v1734_v41  ;;  %v1735_v7 = vmax.f32 %v1711_v15, 0.0  ;;  %2750 = vmatpush3.bf16.msra.mxu1 %v1782_v13 }
 0x844   :  { %v1757_v18 = vmul.f32 %v3516_v58, %v1737_v8  ;;  %2751 = vmatprep.subr.bf16.mxu1 %v2905_v46  ;;  %v1776_v45 = vadd.f32 %v3525_v37, %v1756_v16 }
 0x845   :  { %v1755_v19 = vmul.f32 %v3516_v58, %v1735_v7  ;;  %v1774_v51 = vadd.f32 %v3525_v37, %v1754_v17  ;;  %v1786_v58 = vld [vmem:[%s3631_s2] sm:$0xf] }
 0x846   :  { %v1777_v21 = vadd.f32 %v3525_v37, %v1757_v18 }
 0x847   :  { %v1775_v54 = vadd.f32 %v3525_v37, %v1755_v19  ;;  %2752 = vmatpush3.bf16.msra.mxu1 %v1783_v55  ;;  %v2876_v37 = vld [vmem:[%s3628_s4 + $0x1b8] sm:$0xff]  }
 0x848   :  { %v1785_v22 = vpack.c.bf16 %v1777_v21, %v1776_v45  ;;  %2753 = vmatprep.subr.bf16.mxu1 %v2905_v46  ;;  %2776 = vmatpush3.bf16.msra.mxu0 %v2876_v37 }
 0x849   :  { %v1784_v5 = vpack.c.bf16 %v1775_v54, %v1774_v51 }
 0x84b   :  { %2754 = vmatpush3.bf16.msra.mxu1 %v1784_v5 }
 0x84c   :  { %2755 = vmatprep.subr.bf16.mxu1 %v2905_v46 }
 0x84f   :  { %2756 = vmatpush3.bf16.msra.mxu1 %v1785_v22 }
 0x850   :  { %2781 = vmatprep.subr.bf16.mxu1 %v2905_v46 }
 0x852   :  { %2758 = vmatmul.mubr.bf16.vlgmr.msra.gmra.mrb[64].mxu1 %v1786_v58 }
 0x853   :  { %2797 = vmatprep.mubr.msk.bf16.mxu1 %vm2906_vm0, %v2905_v46  ;;  %2782 = vmatpush3.bf16.msra.mxu1 %v2877_v23 }
 0x854   :  { %2783 = vmatprep.subr.bf16.mxu1 %v2905_v46 }
 0x857   :  { %2784 = vmatpush3.bf16.msra.mxu1 %v2878_v25 }
 0x858   :  { %2785 = vmatprep.subr.bf16.mxu1 %v2905_v46 }
 0x85b   :  { %2786 = vmatpush3.bf16.msra.mxu1 %v2879_v26 }
 0x85c   :  { %2787 = vmatprep.subr.bf16.mxu1 %v2905_v46 }
 0x85f   :  { %2788 = vmatpush3.bf16.msra.mxu1 %v2880_v27 }
 0x860   :  { %2789 = vmatprep.subr.bf16.mxu1 %v2905_v46 }
 0x863   :  { %2790 = vmatpush3.bf16.msra.mxu1 %v2881_v30 }
 0x864   :  { %2791 = vmatprep.subr.bf16.mxu1 %v2905_v46 }
 0x867   :  { %2792 = vmatpush3.bf16.msra.mxu1 %v2882_v31 }
 0x868   :  { %2793 = vmatprep.subr.bf16.mxu1 %v2905_v46 }
 0x86b   :  { %2794 = vmatpush3.bf16.msra.mxu1 %v2883_v36 }
 0x86c   :  { %2795 = vmatprep.subr.bf16.mxu1 %v2905_v46  ;;  %v2273_v46 = vld [vmem:[%s3629_s5 + $0xd] ss:$0 sm:$0xff] }
 0x86f   :  { %2796 = vmatpush3.bf16.msra.mxu1 %v2884_v38 }
 0x925   :  { %v1821_v12 = vpop.f32.mrb[64].mxu1 }
 0x926   :  { %v1833_v33 = vmul.f32 %v1831_v0, %v1821_v12  ;;  %v2759_v6 = vpop.f32.mrb[65].mxu1 }
 0x927   :  { %v1824_v34 = vpop.f32.mrb[66].mxu1 }
 0x928   :  { %v1870_v32 = vpack.c.bf16 %v1833_v33, %v1833_v33  ;;  %v2760_v3 = vpop.f32.mrb[67].mxu1 }
 0x92a   :  { %2778 = vmatmul.mubr.bf16.vlgmr.msra.gmra.mrb[80].mxu0 %v1870_v32 }
 0x9fd   :  { %v1957_v1 = vpop.f32.mrb[80].mxu0 }
 0x9fe   :  { %v1958_v39 = vadd.f32 %v2264_v14, %v1957_v1  ;;  %v2779_v20 = vpop.f32.mrb[81].mxu0 }
 0x9ff   :  { %v1960_v28 = vpop.f32.mrb[82].mxu0 }
 0xa00   :  { %v1963_v24 = vmax.f32 %v1958_v39, 0.0  ;;  %v2780_v43 = vpop.f32.mrb[83].mxu0 }
 0xa02   :  { %v1964_v44 = vpack.c.bf16 %v1963_v24, %v1963_v24 }
 0xa04   :  { %2798 = vmatmul.mubr.bf16.vlgmr.msra.gmra.mrb[68].mxu1 %v1964_v44 }
 0xad7   :  { %v2051_v48 = vpop.f32.mrb[68].mxu1 }
 0xad8   :  { %v2052_v49 = vadd.f32 %v2273_v46, %v2051_v48  ;;  %v2799_v50 = vpop.f32.mrb[69].mxu1 }
 0xad9   :  { %v2054_v52 = vpop.f32.mrb[70].mxu1 }
 0xada   :  { %v2800_v40 = vpop.f32.mrb[71].mxu1  ;;  %v2060_v42 = vsel %vm2059_vm1, %v2052_v49, -1e+30 }
 0xadb   :  { %2061 = vmax.xlane.f32.xlu0 %v2060_v42 }
 0xb68   :  { %v2062_v10 = vpop.xlane.xlu0 %2061 }
 0xb69   :  { %v2063_v53 = vsub.f32 %v2060_v42, %v2062_v10 }
 0xb6b   :  { %v2064_v35 = vmul.f32 1.442695, %v2063_v53 }
 0xb6d   :  { %2893 = vpow2.f32 %v2064_v35 }
 0xb77   :  { %v2894_v56 = vpop.eup %2893 }
 0xb78   :  { %2066 = vadd.xlane.f32.xlu1 %v2894_v56 }
 0xc05   :  { %v2067_v57 = vpop.xlane.xlu1 %2066 }
 0xc06   :  { %2895 = vlog2.f32 %v2067_v57 }
 0xc10   :  { %v2896_v60 = vpop.eup %2895 }
 0xc11   :  { %v2069_v61 = vmul.f32 0.6931472, %v2896_v60 }
 0xc13   :  { %v2070_v62 = vsub.f32 %v2063_v53, %v2069_v61 }
 0xc15   :  { %2071 = vst [vmem:[%s3632_s6] sm:$0xff] %v2070_v62 }

</bundles_post_ra>
